<compile_context>
chip_gen: v6e
topology: v6e:2x2x1
jax: 0.10.0
libtpu: 0.0.40
codegen_flags: <defaults>
</compile_context>

<pallas_src>
import numpy as np
import jax
import jax.numpy as jnp
from jax.experimental import pallas as pl
from jax.experimental.pallas import tpu as pltpu

_EPS = 1e-5  # torch.nn.BatchNorm1d default eps


def _relu(v):
    return jnp.maximum(v, 0.0)


# ----------------------------------------------------------------------------
# Kernel
# ----------------------------------------------------------------------------
def _make_kernel(T2, F, H, O, matmul_dtype):
    f32 = jnp.float32

    def kernel(x_ref, s_ref, q_ref, w1a_ref, w1b_ref, w2_ref, wf_ref,
               fmask_ref, rsum_ref, bias_ref, out_ref):
        def mm(a, w):
            # weight matmul on the MXU; operands in matmul_dtype, f32 accumulate
            return jnp.dot(a.astype(matmul_dtype), w,
                           preferred_element_type=f32)

        def sel(m, a):
            # exact 0/1 shift / stride-2-selection matmul, kept in f32
            return jnp.dot(m, a, preferred_element_type=f32)

        bias = bias_ref[...]                       # (8, >=128) f32

        def b_row(i, width):
            return bias[i:i + 1, 0:width]          # (1, width)

        x = x_ref[...]                             # (N, F) flat batch*time rows

        s_m = s_ref[0]                             # (N, N)  row t -> row t-1
        s_p = s_ref[1]                             # (N, N)  row t -> row t+1
        q_m = q_ref[0]                             # (N2, N) stride-2 o shift(-1)
        q_0 = q_ref[1]                             # (N2, N) stride-2
        q_p = q_ref[2]                             # (N2, N) stride-2 o shift(+1)

        # ---------- ConvResBlock 1 (stride 1); BN folded into weights ----------
        h1 = _relu(mm(x, w1a_ref[0]) + b_row(0, F))                  # conv1 1x1
        y1 = (mm(sel(s_m, h1), w1a_ref[1]) + mm(h1, w1a_ref[2])
              + mm(sel(s_p, h1), w1a_ref[3]) + b_row(1, F))          # conv2 k3 s1
        h1b = _relu(y1)
        main1 = mm(h1b, w1b_ref[0])                                  # conv3 1x1
        res1 = (mm(sel(s_m, x), w1b_ref[1]) + mm(x, w1b_ref[2])
                + mm(sel(s_p, x), w1b_ref[3]))                       # downsample k3 s1
        h = _relu(main1 + res1 + b_row(2, H))                        # (N, H)

        # ---------- ConvResBlock 2 (stride 2 on conv2 + residual) ----------
        g = _relu(mm(h, w2_ref[0]) + b_row(3, H))                    # conv1 1x1
        y2 = (mm(sel(q_m, g), w2_ref[1]) + mm(sel(q_0, g), w2_ref[2])
              + mm(sel(q_p, g), w2_ref[3]) + b_row(4, H))            # conv2 k3 s2
        g2 = _relu(y2)                                               # (N2, H)
        main2 = mm(g2, w2_ref[4])                                    # conv3 1x1
        res2 = (mm(sel(q_m, h), w2_ref[5]) + mm(sel(q_0, h), w2_ref[6])
                + mm(sel(q_p, h), w2_ref[7]))                        # downsample k3 s2
        h2 = _relu(main2 + res2 + b_row(5, H))                       # (N2, H)

        # ---------- final Conv1d(H -> O, kernel = T2) as one matmul ----------
        # Regroup each sequence's (T2, H) rows into a single (T2*H,) row with an
        # exact 0/1 matmul (tile along lanes + mask + per-sequence row-sum), so
        # no in-register sublane->lane reshape is needed.
        h2_tiled = jnp.concatenate([h2] * T2, axis=1) * fmask_ref[...]  # (N2, T2*H)
        h2_flat = sel(rsum_ref[...], h2_tiled)                          # (B_TILE, T2*H)
        z = mm(h2_flat, wf_ref[...]) + b_row(6, O)                      # (B_TILE, O)
        out_ref[...] = z

    return kernel


# ----------------------------------------------------------------------------
# Wrapper
# ----------------------------------------------------------------------------
def _fold_bn(w, b, bn):
    # eval-mode BatchNorm folded into the preceding conv's weight / bias
    gamma, beta, mean, var = bn
    s = gamma / jnp.sqrt(var + _EPS)
    return w * s[:, None, None], (b - mean) * s + beta


def _taps(w):
    # torch Conv1d weight (Cout, Cin, K) -> per-tap (Cin, Cout) matrices
    return [w[:, :, k].T for k in range(w.shape[2])]


def _pick_b_tile(B, T):
    # Aim for ~256 activation rows per grid step (fills the MXU M dimension on
    # v6e/v7x, 2x128 passes on v5e) while keeping the (8, 128) block constraint.
    bt = max(1, 256 // T)
    if bt >= B:
        return B                      # single grid step; block == full batch
    return max(8, (bt // 8) * 8)      # multiple of 8 when the grid has >1 step


def conv_seq_encoder_forward(x, params, matmul_dtype=jnp.float32):
    """x: (B, T, F) float32 -> (B, n_output) float32 (eval-mode forward)."""
    x = x.astype(jnp.float32)
    B, T, F = x.shape
    O, H, t2_w = params['final_w'].shape
    T2 = (T + 2 - 3) // 2 + 1         # window after the single stride-2 block
    if t2_w != T2:
        raise ValueError(f"final_w kernel size {t2_w} != expected window {T2}")

    b_tile = _pick_b_tile(B, T)
    Bp = ((B + b_tile - 1) // b_tile) * b_tile
    if Bp != B:
        x = jnp.concatenate([x, jnp.zeros((Bp - B, T, F), jnp.float32)], axis=0)
    N, N2 = b_tile * T, b_tile * T2
    x2 = x.reshape(Bp * T, F)         # flat, batch-major rows (host-side reshape)

    # ---- exact 0/1 shift / selection matrices (host precomputed, block diag
    #      per sequence; dense (N,N) is fine for modest T) -------------------
    s_m = np.zeros((N, N), np.float32)
    s_p = np.zeros((N, N), np.float32)
    ssel = np.zeros((N2, N), np.float32)
    for bb in range(b_tile):
        for t in range(T):
            i = bb * T + t
            if t > 0:
                s_m[i, i - 1] = 1.0
            if t < T - 1:
                s_p[i, i + 1] = 1.0
        for j in range(T2):
            ssel[bb * T2 + j, bb * T + 2 * j] = 1.0
    shifts = jnp.asarray(np.stack([s_m, s_p]))                      # (2, N, N)
    qsel = jnp.asarray(np.stack([ssel @ s_m, ssel, ssel @ s_p]))    # (3, N2, N)

    # final-conv regroup helpers: per-row lane mask + per-sequence row-sum
    fmask = np.zeros((N2, T2 * H), np.float32)
    rsum = np.zeros((b_tile, N2), np.float32)
    for bb in range(b_tile):
        for j in range(T2):
            i = bb * T2 + j
            fmask[i, j * H:(j + 1) * H] = 1.0
            rsum[bb, i] = 1.0
    fmask = jnp.asarray(fmask)
    rsum = jnp.asarray(rsum)

    # ---- fold eval-mode BatchNorm into the conv weights / biases -----------
    # TODO(synk): training-mode BatchNorm (batch statistics) is not computed
    # inside the kernel; only eval-mode running stats are supported.
    p1, p2 = params['l1'], params['l2']
    w11, b11 = _fold_bn(p1['c1_w'], p1['c1_b'], p1['bn1'])
    w12, b12 = _fold_bn(p1['c2_w'], p1['c2_b'], p1['bn2'])
    w13, b13 = _fold_bn(p1['c3_w'], p1['c3_b'], p1['bn3'])
    wd1, bd1 = _fold_bn(p1['ds_w'], p1['ds_b'], p1['bn4'])
    w21, b21 = _fold_bn(p2['c1_w'], p2['c1_b'], p2['bn1'])
    w22, b22 = _fold_bn(p2['c2_w'], p2['c2_b'], p2['bn2'])
    w23, b23 = _fold_bn(p2['c3_w'], p2['c3_b'], p2['bn3'])
    wd2, bd2 = _fold_bn(p2['ds_w'], p2['ds_b'], p2['bn4'])

    md = matmul_dtype
    w1a = jnp.stack([w11[:, :, 0].T] + _taps(w12)).astype(md)      # (4, F, F)
    w1b = jnp.stack([w13[:, :, 0].T] + _taps(wd1)).astype(md)      # (4, F, H)
    w2s = jnp.stack([w21[:, :, 0].T] + _taps(w22)
                    + [w23[:, :, 0].T] + _taps(wd2)).astype(md)    # (8, H, H)
    wf = jnp.transpose(params['final_w'], (2, 1, 0)).reshape(T2 * H, O).astype(md)

    # one (8, >=128) bias slab; conv3 + downsample biases pre-summed
    bw = max(128, F, H, O)

    def _pad_row(v):
        v = jnp.asarray(v, jnp.float32).reshape(-1)
        return jnp.pad(v, (0, bw - v.shape[0]))

    bias = jnp.stack([_pad_row(b11), _pad_row(b12), _pad_row(b13 + bd1),
                      _pad_row(b21), _pad_row(b22), _pad_row(b23 + bd2),
                      _pad_row(params['final_b']),
                      jnp.zeros((bw,), jnp.float32)])               # (8, bw)

    weights = (shifts, qsel, w1a, w1b, w2s, wf, fmask, rsum, bias)

    def _resident(a):
        im = (lambda b: (0, 0)) if a.ndim == 2 else (lambda b: (0, 0, 0))
        return pl.BlockSpec(a.shape, im)

    grid = (Bp // b_tile,)

    # advisory cost estimate for XLA scheduling
    mms = ([(N, N, F)] * 4 + [(N, F, F)] * 4 + [(N, F, H)] * 4
           + [(N2, N, H)] * 6 + [(N, H, H)] + [(N2, H, H)] * 7
           + [(b_tile, N2, T2 * H), (b_tile, T2 * H, O)])
    flops = grid[0] * sum(2 * m * k * n for m, k, n in mms)
    bytes_accessed = int(x2.size * 4 + Bp * O * 4
                         + sum(int(a.size) * a.dtype.itemsize for a in weights))

    kernel = _make_kernel(T2, F, H, O, md)
    out = pl.pallas_call(
        kernel,
        out_shape=jax.ShapeDtypeStruct((Bp, O), jnp.float32),
        grid=grid,
        in_specs=[pl.BlockSpec((N, F), lambda b: (b, 0))]
                 + [_resident(a) for a in weights],
        out_specs=pl.BlockSpec((b_tile, O), lambda b: (b, 0)),
        compiler_params=pltpu.CompilerParams(
            dimension_semantics=("parallel",)),
        cost_estimate=pl.CostEstimate(flops=int(flops), transcendentals=0,
                                      bytes_accessed=bytes_accessed),
    )(x2, *weights)
    return out[:B]


# ----------------------------------------------------------------------------
# Pure-JAX reference (matches the PyTorch ConvSeqEncoder forward, eval mode)
# ----------------------------------------------------------------------------
def reference_forward(x, params):
    hi = jax.lax.Precision.HIGHEST

    def conv1d(h, w, b, stride=1, pad=0):
        y = jax.lax.conv_general_dilated(
            h, w, window_strides=(stride,), padding=[(pad, pad)],
            dimension_numbers=('NCH', 'OIH', 'NCH'), precision=hi)
        return y + b[None, :, None]

    def bn(h, p):
        gamma, beta, mean, var = p
        inv = gamma / jnp.sqrt(var + _EPS)
        return (h - mean[None, :, None]) * inv[None, :, None] + beta[None, :, None]

    h = jnp.transpose(x, (0, 2, 1)).astype(jnp.float32)        # (B, F, T)
    for lname, stride in (('l1', 1), ('l2', 2)):
        p = params[lname]
        out = _relu(bn(conv1d(h, p['c1_w'], p['c1_b']), p['bn1']))
        out = _relu(bn(conv1d(out, p['c2_w'], p['c2_b'], stride=stride, pad=1),
                       p['bn2']))
        out = bn(conv1d(out, p['c3_w'], p['c3_b']), p['bn3'])
        res = bn(conv1d(h, p['ds_w'], p['ds_b'], stride=stride, pad=1), p['bn4'])
        h = _relu(out + res)
    z = conv1d(h, params['final_w'], params['final_b'])        # (B, O, 1)
    return z[:, :, 0]


if __name__ == "__main__":
    # Small config consistent with the module:
    #   n_features=4, n_hidden='32', n_output=128 (module default), n_layers=3,
    #   seq_len=16, bias=True, batch_norm=True, activation='ReLU', batch=2.
    B, T, F = 2, 16, 4
    H, O = 32, 128
    T2 = (T - 1) // 2 + 1      # remaining window after the stride-2 block -> 8

    key = jax.random.PRNGKey(0)
    keys = iter(jax.random.split(key, 80))

    def conv_w(cout, cin, k):
        bound = float(1.0 / (cin * k) ** 0.5)
        return jax.random.uniform(next(keys), (cout, cin, k), jnp.float32,
                                  -bound, bound)

    def conv_b(cout, cin, k):
        bound = float(1.0 / (cin * k) ** 0.5)
        return jax.random.uniform(next(keys), (cout,), jnp.float32, -bound, bound)

    def bn_params(c):
        return (jax.random.uniform(next(keys), (c,), jnp.float32, 0.5, 1.5),   # gamma
                jax.random.uniform(next(keys), (c,), jnp.float32, -0.5, 0.5),  # beta
                jax.random.uniform(next(keys), (c,), jnp.float32, -0.5, 0.5),  # running_mean
                jax.random.uniform(next(keys), (c,), jnp.float32, 0.5, 1.5))   # running_var

    def res_block(cin, cout):
        return dict(
            c1_w=conv_w(cin, cin, 1), c1_b=conv_b(cin, cin, 1), bn1=bn_params(cin),
            c2_w=conv_w(cin, cin, 3), c2_b=conv_b(cin, cin, 3), bn2=bn_params(cin),
            c3_w=conv_w(cout, cin, 1), c3_b=conv_b(cout, cin, 1), bn3=bn_params(cout),
            ds_w=conv_w(cout, cin, 3), ds_b=conv_b(cout, cin, 3), bn4=bn_params(cout),
        )

    params = dict(
        l1=res_block(F, H),
        l2=res_block(H, H),
        final_w=conv_w(O, H, T2),
        final_b=conv_b(O, H, T2),
    )

    x = jax.random.normal(next(keys), (B, T, F), dtype=jnp.float32)

    ref = reference_forward(x, params)

    # f32 matmul operands: tight correctness check
    out = conv_seq_encoder_forward(x, params, matmul_dtype=jnp.float32)
    out = jax.block_until_ready(out)
    assert out.shape == (B, O), out.shape
    err32 = float(jnp.max(jnp.abs(out - ref)))
    assert jnp.allclose(out, ref, atol=5e-3, rtol=5e-3), f"f32 max abs err = {err32}"

    # bf16 matmul operands (v6e/v7x fast path), f32 accumulation: loose check
    out16 = conv_seq_encoder_forward(x, params, matmul_dtype=jnp.bfloat16)
    out16 = jax.block_until_ready(out16)
    err16 = float(jnp.max(jnp.abs(out16 - ref)))
    assert jnp.allclose(out16, ref, atol=5e-2, rtol=5e-2), f"bf16 max abs err = {err16}"

    print("KERNEL_OK")
</pallas_src>

<mosaic_0001>
module attributes {stable_mosaic.version = 11 : i64} {
  func.func @kernel(%arg0: i32, %arg1: memref<32x4xf32, #tpu.memory_space<vmem>>, %arg2: memref<2x32x32xf32, #tpu.memory_space<vmem>>, %arg3: memref<3x16x32xf32, #tpu.memory_space<vmem>>, %arg4: memref<4x4x4xf32, #tpu.memory_space<vmem>>, %arg5: memref<4x4x32xf32, #tpu.memory_space<vmem>>, %arg6: memref<8x32x32xf32, #tpu.memory_space<vmem>>, %arg7: memref<256x128xf32, #tpu.memory_space<vmem>>, %arg8: memref<16x256xf32, #tpu.memory_space<vmem>>, %arg9: memref<2x16xf32, #tpu.memory_space<vmem>>, %arg10: memref<8x128xf32, #tpu.memory_space<vmem>>, %arg11: memref<2x128xf32, #tpu.memory_space<vmem>>) attributes {dimension_semantics = [#tpu.dimension_semantics<parallel>], iteration_bounds = array<i64: 1>, scalar_prefetch = 0 : i64, scratch_operands = 0 : i64, tpu.core_type = #tpu.core_type<tc>, window_params = [{transform_indices = @transform_0, window_bounds = array<i64: 32, 4>}, {pipeline_mode = #tpu.pipeline_mode<synchronous>, transform_indices = @transform_1, window_bounds = array<i64: 2, 32, 32>}, {pipeline_mode = #tpu.pipeline_mode<synchronous>, transform_indices = @transform_2, window_bounds = array<i64: 3, 16, 32>}, {pipeline_mode = #tpu.pipeline_mode<synchronous>, transform_indices = @transform_3, window_bounds = array<i64: 4, 4, 4>}, {pipeline_mode = #tpu.pipeline_mode<synchronous>, transform_indices = @transform_4, window_bounds = array<i64: 4, 4, 32>}, {pipeline_mode = #tpu.pipeline_mode<synchronous>, transform_indices = @transform_5, window_bounds = array<i64: 8, 32, 32>}, {pipeline_mode = #tpu.pipeline_mode<synchronous>, transform_indices = @transform_6, window_bounds = array<i64: 256, 128>}, {pipeline_mode = #tpu.pipeline_mode<synchronous>, transform_indices = @transform_7, window_bounds = array<i64: 16, 256>}, {pipeline_mode = #tpu.pipeline_mode<synchronous>, transform_indices = @transform_8, window_bounds = array<i64: 2, 16>}, {pipeline_mode = #tpu.pipeline_mode<synchronous>, transform_indices = @transform_9, window_bounds = array<i64: 8, 128>}, {transform_indices = @transform_10, window_bounds = array<i64: 2, 128>}]} {
    %c0 = arith.constant 0 : index
    %c0_0 = arith.constant 0 : index
    %0 = vector.load %arg10[%c0, %c0_0] : memref<8x128xf32, #tpu.memory_space<vmem>>, vector<8x128xf32>
    %c0_1 = arith.constant 0 : index
    %c0_2 = arith.constant 0 : index
    %1 = vector.load %arg1[%c0_1, %c0_2] : memref<32x4xf32, #tpu.memory_space<vmem>>, vector<32x4xf32>
    %c0_3 = arith.constant 0 : index
    %c0_4 = arith.constant 0 : index
    %c0_5 = arith.constant 0 : index
    %2 = vector.load %arg2[%c0_3, %c0_4, %c0_5] : memref<2x32x32xf32, #tpu.memory_space<vmem>>, vector<1x32x32xf32>
    %3 = vector.shape_cast %2 : vector<1x32x32xf32> to vector<32x32xf32>
    %c1 = arith.constant 1 : index
    %c0_6 = arith.constant 0 : index
    %c0_7 = arith.constant 0 : index
    %4 = vector.load %arg2[%c1, %c0_6, %c0_7] : memref<2x32x32xf32, #tpu.memory_space<vmem>>, vector<1x32x32xf32>
    %5 = vector.shape_cast %4 : vector<1x32x32xf32> to vector<32x32xf32>
    %c0_8 = arith.constant 0 : index
    %c0_9 = arith.constant 0 : index
    %c0_10 = arith.constant 0 : index
    %6 = vector.load %arg3[%c0_8, %c0_9, %c0_10] : memref<3x16x32xf32, #tpu.memory_space<vmem>>, vector<1x16x32xf32>
    %7 = vector.shape_cast %6 : vector<1x16x32xf32> to vector<16x32xf32>
    %c1_11 = arith.constant 1 : index
    %c0_12 = arith.constant 0 : index
    %c0_13 = arith.constant 0 : index
    %8 = vector.load %arg3[%c1_11, %c0_12, %c0_13] : memref<3x16x32xf32, #tpu.memory_space<vmem>>, vector<1x16x32xf32>
    %9 = vector.shape_cast %8 : vector<1x16x32xf32> to vector<16x32xf32>
    %c2 = arith.constant 2 : index
    %c0_14 = arith.constant 0 : index
    %c0_15 = arith.constant 0 : index
    %10 = vector.load %arg3[%c2, %c0_14, %c0_15] : memref<3x16x32xf32, #tpu.memory_space<vmem>>, vector<1x16x32xf32>
    %11 = vector.shape_cast %10 : vector<1x16x32xf32> to vector<16x32xf32>
    %c0_16 = arith.constant 0 : index
    %c0_17 = arith.constant 0 : index
    %c0_18 = arith.constant 0 : index
    %12 = vector.load %arg4[%c0_16, %c0_17, %c0_18] : memref<4x4x4xf32, #tpu.memory_space<vmem>>, vector<1x4x4xf32>
    %13 = vector.shape_cast %12 : vector<1x4x4xf32> to vector<4x4xf32>
    %cst = arith.constant dense<0.000000e+00> : vector<32x4xf32>
    %14 = tpu.matmul %1, %13, %cst {dimension_numbers = #tpu.dot_dimension_numbers<[1], [0], [0], [1], [0, 0, 1, 1], [], []>} : vector<32x4xf32>, vector<4x4xf32>, vector<32x4xf32> -> vector<32x4xf32>
    %15 = vector.extract_strided_slice %0 {offsets = [0, 0], sizes = [1, 4], strides = [1, 1]} : vector<8x128xf32> to vector<1x4xf32>
    %16 = vector.broadcast %15 : vector<1x4xf32> to vector<32x4xf32>
    %17 = arith.addf %14, %16 : vector<32x4xf32>
    %cst_19 = arith.constant 0.000000e+00 : f32
    %18 = vector.broadcast %cst_19 : f32 to vector<32x4xf32>
    %19 = arith.maximumf %17, %18 : vector<32x4xf32>
    %cst_20 = arith.constant dense<0.000000e+00> : vector<32x4xf32>
    %20 = tpu.matmul %3, %19, %cst_20 {dimension_numbers = #tpu.dot_dimension_numbers<[1], [0], [0], [1], [0, 0, 1, 1], [], []>} : vector<32x32xf32>, vector<32x4xf32>, vector<32x4xf32> -> vector<32x4xf32>
    %c1_21 = arith.constant 1 : index
    %c0_22 = arith.constant 0 : index
    %c0_23 = arith.constant 0 : index
    %21 = vector.load %arg4[%c1_21, %c0_22, %c0_23] : memref<4x4x4xf32, #tpu.memory_space<vmem>>, vector<1x4x4xf32>
    %22 = vector.shape_cast %21 : vector<1x4x4xf32> to vector<4x4xf32>
    %cst_24 = arith.constant dense<0.000000e+00> : vector<32x4xf32>
    %23 = tpu.matmul %20, %22, %cst_24 {dimension_numbers = #tpu.dot_dimension_numbers<[1], [0], [0], [1], [0, 0, 1, 1], [], []>} : vector<32x4xf32>, vector<4x4xf32>, vector<32x4xf32> -> vector<32x4xf32>
    %c2_25 = arith.constant 2 : index
    %c0_26 = arith.constant 0 : index
    %c0_27 = arith.constant 0 : index
    %24 = vector.load %arg4[%c2_25, %c0_26, %c0_27] : memref<4x4x4xf32, #tpu.memory_space<vmem>>, vector<1x4x4xf32>
    %25 = vector.shape_cast %24 : vector<1x4x4xf32> to vector<4x4xf32>
    %cst_28 = arith.constant dense<0.000000e+00> : vector<32x4xf32>
    %26 = tpu.matmul %19, %25, %cst_28 {dimension_numbers = #tpu.dot_dimension_numbers<[1], [0], [0], [1], [0, 0, 1, 1], [], []>} : vector<32x4xf32>, vector<4x4xf32>, vector<32x4xf32> -> vector<32x4xf32>
    %27 = arith.addf %23, %26 : vector<32x4xf32>
    %cst_29 = arith.constant dense<0.000000e+00> : vector<32x4xf32>
    %28 = tpu.matmul %5, %19, %cst_29 {dimension_numbers = #tpu.dot_dimension_numbers<[1], [0], [0], [1], [0, 0, 1, 1], [], []>} : vector<32x32xf32>, vector<32x4xf32>, vector<32x4xf32> -> vector<32x4xf32>
    %c3 = arith.constant 3 : index
    %c0_30 = arith.constant 0 : index
    %c0_31 = arith.constant 0 : index
    %29 = vector.load %arg4[%c3, %c0_30, %c0_31] : memref<4x4x4xf32, #tpu.memory_space<vmem>>, vector<1x4x4xf32>
    %30 = vector.shape_cast %29 : vector<1x4x4xf32> to vector<4x4xf32>
    %cst_32 = arith.constant dense<0.000000e+00> : vector<32x4xf32>
    %31 = tpu.matmul %28, %30, %cst_32 {dimension_numbers = #tpu.dot_dimension_numbers<[1], [0], [0], [1], [0, 0, 1, 1], [], []>} : vector<32x4xf32>, vector<4x4xf32>, vector<32x4xf32> -> vector<32x4xf32>
    %32 = arith.addf %27, %31 : vector<32x4xf32>
    %33 = vector.extract_strided_slice %0 {offsets = [1, 0], sizes = [1, 4], strides = [1, 1]} : vector<8x128xf32> to vector<1x4xf32>
    %34 = vector.broadcast %33 : vector<1x4xf32> to vector<32x4xf32>
    %35 = arith.addf %32, %34 : vector<32x4xf32>
    %cst_33 = arith.constant 0.000000e+00 : f32
    %36 = vector.broadcast %cst_33 : f32 to vector<32x4xf32>
    %37 = arith.maximumf %35, %36 : vector<32x4xf32>
    %c0_34 = arith.constant 0 : index
    %c0_35 = arith.constant 0 : index
    %c0_36 = arith.constant 0 : index
    %38 = vector.load %arg5[%c0_34, %c0_35, %c0_36] : memref<4x4x32xf32, #tpu.memory_space<vmem>>, vector<1x4x32xf32>
    %39 = vector.shape_cast %38 : vector<1x4x32xf32> to vector<4x32xf32>
    %cst_37 = arith.constant dense<0.000000e+00> : vector<32x32xf32>
    %40 = tpu.matmul %37, %39, %cst_37 {dimension_numbers = #tpu.dot_dimension_numbers<[1], [0], [0], [1], [0, 0, 1, 1], [], []>} : vector<32x4xf32>, vector<4x32xf32>, vector<32x32xf32> -> vector<32x32xf32>
    %cst_38 = arith.constant dense<0.000000e+00> : vector<32x4xf32>
    %41 = tpu.matmul %3, %1, %cst_38 {dimension_numbers = #tpu.dot_dimension_numbers<[1], [0], [0], [1], [0, 0, 1, 1], [], []>} : vector<32x32xf32>, vector<32x4xf32>, vector<32x4xf32> -> vector<32x4xf32>
    %c1_39 = arith.constant 1 : index
    %c0_40 = arith.constant 0 : index
    %c0_41 = arith.constant 0 : index
    %42 = vector.load %arg5[%c1_39, %c0_40, %c0_41] : memref<4x4x32xf32, #tpu.memory_space<vmem>>, vector<1x4x32xf32>
    %43 = vector.shape_cast %42 : vector<1x4x32xf32> to vector<4x32xf32>
    %cst_42 = arith.constant dense<0.000000e+00> : vector<32x32xf32>
    %44 = tpu.matmul %41, %43, %cst_42 {dimension_numbers = #tpu.dot_dimension_numbers<[1], [0], [0], [1], [0, 0, 1, 1], [], []>} : vector<32x4xf32>, vector<4x32xf32>, vector<32x32xf32> -> vector<32x32xf32>
    %c2_43 = arith.constant 2 : index
    %c0_44 = arith.constant 0 : index
    %c0_45 = arith.constant 0 : index
    %45 = vector.load %arg5[%c2_43, %c0_44, %c0_45] : memref<4x4x32xf32, #tpu.memory_space<vmem>>, vector<1x4x32xf32>
    %46 = vector.shape_cast %45 : vector<1x4x32xf32> to vector<4x32xf32>
    %cst_46 = arith.constant dense<0.000000e+00> : vector<32x32xf32>
    %47 = tpu.matmul %1, %46, %cst_46 {dimension_numbers = #tpu.dot_dimension_numbers<[1], [0], [0], [1], [0, 0, 1, 1], [], []>} : vector<32x4xf32>, vector<4x32xf32>, vector<32x32xf32> -> vector<32x32xf32>
    %48 = arith.addf %44, %47 : vector<32x32xf32>
    %cst_47 = arith.constant dense<0.000000e+00> : vector<32x4xf32>
    %49 = tpu.matmul %5, %1, %cst_47 {dimension_numbers = #tpu.dot_dimension_numbers<[1], [0], [0], [1], [0, 0, 1, 1], [], []>} : vector<32x32xf32>, vector<32x4xf32>, vector<32x4xf32> -> vector<32x4xf32>
    %c3_48 = arith.constant 3 : index
    %c0_49 = arith.constant 0 : index
    %c0_50 = arith.constant 0 : index
    %50 = vector.load %arg5[%c3_48, %c0_49, %c0_50] : memref<4x4x32xf32, #tpu.memory_space<vmem>>, vector<1x4x32xf32>
    %51 = vector.shape_cast %50 : vector<1x4x32xf32> to vector<4x32xf32>
    %cst_51 = arith.constant dense<0.000000e+00> : vector<32x32xf32>
    %52 = tpu.matmul %49, %51, %cst_51 {dimension_numbers = #tpu.dot_dimension_numbers<[1], [0], [0], [1], [0, 0, 1, 1], [], []>} : vector<32x4xf32>, vector<4x32xf32>, vector<32x32xf32> -> vector<32x32xf32>
    %53 = arith.addf %48, %52 : vector<32x32xf32>
    %54 = arith.addf %40, %53 : vector<32x32xf32>
    %55 = vector.extract_strided_slice %0 {offsets = [2, 0], sizes = [1, 32], strides = [1, 1]} : vector<8x128xf32> to vector<1x32xf32>
    %56 = vector.broadcast %55 : vector<1x32xf32> to vector<32x32xf32>
    %57 = arith.addf %54, %56 : vector<32x32xf32>
    %cst_52 = arith.constant 0.000000e+00 : f32
    %58 = vector.broadcast %cst_52 : f32 to vector<32x32xf32>
    %59 = arith.maximumf %57, %58 : vector<32x32xf32>
    %c0_53 = arith.constant 0 : index
    %c0_54 = arith.constant 0 : index
    %c0_55 = arith.constant 0 : index
    %60 = vector.load %arg6[%c0_53, %c0_54, %c0_55] : memref<8x32x32xf32, #tpu.memory_space<vmem>>, vector<1x32x32xf32>
    %61 = vector.shape_cast %60 : vector<1x32x32xf32> to vector<32x32xf32>
    %cst_56 = arith.constant dense<0.000000e+00> : vector<32x32xf32>
    %62 = tpu.matmul %59, %61, %cst_56 {dimension_numbers = #tpu.dot_dimension_numbers<[1], [0], [0], [1], [0, 0, 1, 1], [], []>} : vector<32x32xf32>, vector<32x32xf32>, vector<32x32xf32> -> vector<32x32xf32>
    %63 = vector.extract_strided_slice %0 {offsets = [3, 0], sizes = [1, 32], strides = [1, 1]} : vector<8x128xf32> to vector<1x32xf32>
    %64 = vector.broadcast %63 : vector<1x32xf32> to vector<32x32xf32>
    %65 = arith.addf %62, %64 : vector<32x32xf32>
    %cst_57 = arith.constant 0.000000e+00 : f32
    %66 = vector.broadcast %cst_57 : f32 to vector<32x32xf32>
    %67 = arith.maximumf %65, %66 : vector<32x32xf32>
    %cst_58 = arith.constant dense<0.000000e+00> : vector<16x32xf32>
    %68 = tpu.matmul %7, %67, %cst_58 {dimension_numbers = #tpu.dot_dimension_numbers<[1], [0], [0], [1], [0, 0, 1, 1], [], []>} : vector<16x32xf32>, vector<32x32xf32>, vector<16x32xf32> -> vector<16x32xf32>
    %c1_59 = arith.constant 1 : index
    %c0_60 = arith.constant 0 : index
    %c0_61 = arith.constant 0 : index
    %69 = vector.load %arg6[%c1_59, %c0_60, %c0_61] : memref<8x32x32xf32, #tpu.memory_space<vmem>>, vector<1x32x32xf32>
    %70 = vector.shape_cast %69 : vector<1x32x32xf32> to vector<32x32xf32>
    %cst_62 = arith.constant dense<0.000000e+00> : vector<16x32xf32>
    %71 = tpu.matmul %68, %70, %cst_62 {dimension_numbers = #tpu.dot_dimension_numbers<[1], [0], [0], [1], [0, 0, 1, 1], [], []>} : vector<16x32xf32>, vector<32x32xf32>, vector<16x32xf32> -> vector<16x32xf32>
    %cst_63 = arith.constant dense<0.000000e+00> : vector<16x32xf32>
    %72 = tpu.matmul %9, %67, %cst_63 {dimension_numbers = #tpu.dot_dimension_numbers<[1], [0], [0], [1], [0, 0, 1, 1], [], []>} : vector<16x32xf32>, vector<32x32xf32>, vector<16x32xf32> -> vector<16x32xf32>
    %c2_64 = arith.constant 2 : index
    %c0_65 = arith.constant 0 : index
    %c0_66 = arith.constant 0 : index
    %73 = vector.load %arg6[%c2_64, %c0_65, %c0_66] : memref<8x32x32xf32, #tpu.memory_space<vmem>>, vector<1x32x32xf32>
    %74 = vector.shape_cast %73 : vector<1x32x32xf32> to vector<32x32xf32>
    %cst_67 = arith.constant dense<0.000000e+00> : vector<16x32xf32>
    %75 = tpu.matmul %72, %74, %cst_67 {dimension_numbers = #tpu.dot_dimension_numbers<[1], [0], [0], [1], [0, 0, 1, 1], [], []>} : vector<16x32xf32>, vector<32x32xf32>, vector<16x32xf32> -> vector<16x32xf32>
    %76 = arith.addf %71, %75 : vector<16x32xf32>
    %cst_68 = arith.constant dense<0.000000e+00> : vector<16x32xf32>
    %77 = tpu.matmul %11, %67, %cst_68 {dimension_numbers = #tpu.dot_dimension_numbers<[1], [0], [0], [1], [0, 0, 1, 1], [], []>} : vector<16x32xf32>, vector<32x32xf32>, vector<16x32xf32> -> vector<16x32xf32>
    %c3_69 = arith.constant 3 : index
    %c0_70 = arith.constant 0 : index
    %c0_71 = arith.constant 0 : index
    %78 = vector.load %arg6[%c3_69, %c0_70, %c0_71] : memref<8x32x32xf32, #tpu.memory_space<vmem>>, vector<1x32x32xf32>
    %79 = vector.shape_cast %78 : vector<1x32x32xf32> to vector<32x32xf32>
    %cst_72 = arith.constant dense<0.000000e+00> : vector<16x32xf32>
    %80 = tpu.matmul %77, %79, %cst_72 {dimension_numbers = #tpu.dot_dimension_numbers<[1], [0], [0], [1], [0, 0, 1, 1], [], []>} : vector<16x32xf32>, vector<32x32xf32>, vector<16x32xf32> -> vector<16x32xf32>
    %81 = arith.addf %76, %80 : vector<16x32xf32>
    %82 = vector.extract_strided_slice %0 {offsets = [4, 0], sizes = [1, 32], strides = [1, 1]} : vector<8x128xf32> to vector<1x32xf32>
    %83 = vector.broadcast %82 : vector<1x32xf32> to vector<16x32xf32>
    %84 = arith.addf %81, %83 : vector<16x32xf32>
    %cst_73 = arith.constant 0.000000e+00 : f32
    %85 = vector.broadcast %cst_73 : f32 to vector<16x32xf32>
    %86 = arith.maximumf %84, %85 : vector<16x32xf32>
    %c4 = arith.constant 4 : index
    %c0_74 = arith.constant 0 : index
    %c0_75 = arith.constant 0 : index
    %87 = vector.load %arg6[%c4, %c0_74, %c0_75] : memref<8x32x32xf32, #tpu.memory_space<vmem>>, vector<1x32x32xf32>
    %88 = vector.shape_cast %87 : vector<1x32x32xf32> to vector<32x32xf32>
    %cst_76 = arith.constant dense<0.000000e+00> : vector<16x32xf32>
    %89 = tpu.matmul %86, %88, %cst_76 {dimension_numbers = #tpu.dot_dimension_numbers<[1], [0], [0], [1], [0, 0, 1, 1], [], []>} : vector<16x32xf32>, vector<32x32xf32>, vector<16x32xf32> -> vector<16x32xf32>
    %cst_77 = arith.constant dense<0.000000e+00> : vector<16x32xf32>
    %90 = tpu.matmul %7, %59, %cst_77 {dimension_numbers = #tpu.dot_dimension_numbers<[1], [0], [0], [1], [0, 0, 1, 1], [], []>} : vector<16x32xf32>, vector<32x32xf32>, vector<16x32xf32> -> vector<16x32xf32>
    %c5 = arith.constant 5 : index
    %c0_78 = arith.constant 0 : index
    %c0_79 = arith.constant 0 : index
    %91 = vector.load %arg6[%c5, %c0_78, %c0_79] : memref<8x32x32xf32, #tpu.memory_space<vmem>>, vector<1x32x32xf32>
    %92 = vector.shape_cast %91 : vector<1x32x32xf32> to vector<32x32xf32>
    %cst_80 = arith.constant dense<0.000000e+00> : vector<16x32xf32>
    %93 = tpu.matmul %90, %92, %cst_80 {dimension_numbers = #tpu.dot_dimension_numbers<[1], [0], [0], [1], [0, 0, 1, 1], [], []>} : vector<16x32xf32>, vector<32x32xf32>, vector<16x32xf32> -> vector<16x32xf32>
    %cst_81 = arith.constant dense<0.000000e+00> : vector<16x32xf32>
    %94 = tpu.matmul %9, %59, %cst_81 {dimension_numbers = #tpu.dot_dimension_numbers<[1], [0], [0], [1], [0, 0, 1, 1], [], []>} : vector<16x32xf32>, vector<32x32xf32>, vector<16x32xf32> -> vector<16x32xf32>
    %c6 = arith.constant 6 : index
    %c0_82 = arith.constant 0 : index
    %c0_83 = arith.constant 0 : index
    %95 = vector.load %arg6[%c6, %c0_82, %c0_83] : memref<8x32x32xf32, #tpu.memory_space<vmem>>, vector<1x32x32xf32>
    %96 = vector.shape_cast %95 : vector<1x32x32xf32> to vector<32x32xf32>
    %cst_84 = arith.constant dense<0.000000e+00> : vector<16x32xf32>
    %97 = tpu.matmul %94, %96, %cst_84 {dimension_numbers = #tpu.dot_dimension_numbers<[1], [0], [0], [1], [0, 0, 1, 1], [], []>} : vector<16x32xf32>, vector<32x32xf32>, vector<16x32xf32> -> vector<16x32xf32>
    %98 = arith.addf %93, %97 : vector<16x32xf32>
    %cst_85 = arith.constant dense<0.000000e+00> : vector<16x32xf32>
    %99 = tpu.matmul %11, %59, %cst_85 {dimension_numbers = #tpu.dot_dimension_numbers<[1], [0], [0], [1], [0, 0, 1, 1], [], []>} : vector<16x32xf32>, vector<32x32xf32>, vector<16x32xf32> -> vector<16x32xf32>
    %c7 = arith.constant 7 : index
    %c0_86 = arith.constant 0 : index
    %c0_87 = arith.constant 0 : index
    %100 = vector.load %arg6[%c7, %c0_86, %c0_87] : memref<8x32x32xf32, #tpu.memory_space<vmem>>, vector<1x32x32xf32>
    %101 = vector.shape_cast %100 : vector<1x32x32xf32> to vector<32x32xf32>
    %cst_88 = arith.constant dense<0.000000e+00> : vector<16x32xf32>
    %102 = tpu.matmul %99, %101, %cst_88 {dimension_numbers = #tpu.dot_dimension_numbers<[1], [0], [0], [1], [0, 0, 1, 1], [], []>} : vector<16x32xf32>, vector<32x32xf32>, vector<16x32xf32> -> vector<16x32xf32>
    %103 = arith.addf %98, %102 : vector<16x32xf32>
    %104 = arith.addf %89, %103 : vector<16x32xf32>
    %105 = vector.extract_strided_slice %0 {offsets = [5, 0], sizes = [1, 32], strides = [1, 1]} : vector<8x128xf32> to vector<1x32xf32>
    %106 = vector.broadcast %105 : vector<1x32xf32> to vector<16x32xf32>
    %107 = arith.addf %104, %106 : vector<16x32xf32>
    %cst_89 = arith.constant 0.000000e+00 : f32
    %108 = vector.broadcast %cst_89 : f32 to vector<16x32xf32>
    %109 = arith.maximumf %107, %108 : vector<16x32xf32>
    %110 = tpu.concatenate %109, %109, %109, %109, %109, %109, %109, %109 in 1 : vector<16x32xf32>, vector<16x32xf32>, vector<16x32xf32>, vector<16x32xf32>, vector<16x32xf32>, vector<16x32xf32>, vector<16x32xf32>, vector<16x32xf32> -> vector<16x256xf32>
    %c0_90 = arith.constant 0 : index
    %c0_91 = arith.constant 0 : index
    %111 = vector.load %arg8[%c0_90, %c0_91] : memref<16x256xf32, #tpu.memory_space<vmem>>, vector<16x256xf32>
    %112 = arith.mulf %110, %111 : vector<16x256xf32>
    %c0_92 = arith.constant 0 : index
    %c0_93 = arith.constant 0 : index
    %113 = vector.load %arg9[%c0_92, %c0_93] : memref<2x16xf32, #tpu.memory_space<vmem>>, vector<2x16xf32>
    %cst_94 = arith.constant dense<0.000000e+00> : vector<2x256xf32>
    %114 = tpu.matmul %113, %112, %cst_94 {dimension_numbers = #tpu.dot_dimension_numbers<[1], [0], [0], [1], [0, 0, 1, 1], [], []>} : vector<2x16xf32>, vector<16x256xf32>, vector<2x256xf32> -> vector<2x256xf32>
    %c0_95 = arith.constant 0 : index
    %c0_96 = arith.constant 0 : index
    %115 = vector.load %arg7[%c0_95, %c0_96] : memref<256x128xf32, #tpu.memory_space<vmem>>, vector<256x128xf32>
    %cst_97 = arith.constant dense<0.000000e+00> : vector<2x128xf32>
    %116 = tpu.matmul %114, %115, %cst_97 {dimension_numbers = #tpu.dot_dimension_numbers<[1], [0], [0], [1], [0, 0, 1, 1], [], []>} : vector<2x256xf32>, vector<256x128xf32>, vector<2x128xf32> -> vector<2x128xf32>
    %117 = vector.extract_strided_slice %0 {offsets = [6, 0], sizes = [1, 128], strides = [1, 1]} : vector<8x128xf32> to vector<1x128xf32>
    %118 = vector.broadcast %117 : vector<1x128xf32> to vector<2x128xf32>
    %119 = arith.addf %116, %118 : vector<2x128xf32>
    %c0_98 = arith.constant 0 : index
    %c0_99 = arith.constant 0 : index
    %120 = vector.load %arg11[%c0_98, %c0_99] : memref<2x128xf32, #tpu.memory_space<vmem>>, vector<2x128xf32>
    tpu.vector_store %arg11[%c0_98, %c0_99], %119 {strides = array<i32>} : memref<2x128xf32, #tpu.memory_space<vmem>>, vector<2x128xf32>,
    return
  }
  func.func @transform_0(%arg0: i32) -> (i32, i32) {
    %c0_i32 = arith.constant 0 : i32
    %c0_i32_0 = arith.constant 0 : i32
    return %arg0, %c0_i32 : i32, i32
  }
  func.func @transform_1(%arg0: i32) -> (i32, i32, i32) {
    %c0_i32 = arith.constant 0 : i32
    %c0_i32_0 = arith.constant 0 : i32
    %c0_i32_1 = arith.constant 0 : i32
    %c0_i32_2 = arith.constant 0 : i32
    return %c0_i32, %c0_i32_0, %c0_i32_1 : i32, i32, i32
  }
  func.func @transform_2(%arg0: i32) -> (i32, i32, i32) {
    %c0_i32 = arith.constant 0 : i32
    %c0_i32_0 = arith.constant 0 : i32
    %c0_i32_1 = arith.constant 0 : i32
    %c0_i32_2 = arith.constant 0 : i32
    return %c0_i32, %c0_i32_0, %c0_i32_1 : i32, i32, i32
  }
  func.func @transform_3(%arg0: i32) -> (i32, i32, i32) {
    %c0_i32 = arith.constant 0 : i32
    %c0_i32_0 = arith.constant 0 : i32
    %c0_i32_1 = arith.constant 0 : i32
    %c0_i32_2 = arith.constant 0 : i32
    return %c0_i32, %c0_i32_0, %c0_i32_1 : i32, i32, i32
  }
  func.func @transform_4(%arg0: i32) -> (i32, i32, i32) {
    %c0_i32 = arith.constant 0 : i32
    %c0_i32_0 = arith.constant 0 : i32
    %c0_i32_1 = arith.constant 0 : i32
    %c0_i32_2 = arith.constant 0 : i32
    return %c0_i32, %c0_i32_0, %c0_i32_1 : i32, i32, i32
  }
  func.func @transform_5(%arg0: i32) -> (i32, i32, i32) {
    %c0_i32 = arith.constant 0 : i32
    %c0_i32_0 = arith.constant 0 : i32
    %c0_i32_1 = arith.constant 0 : i32
    %c0_i32_2 = arith.constant 0 : i32
    return %c0_i32, %c0_i32_0, %c0_i32_1 : i32, i32, i32
  }
  func.func @transform_6(%arg0: i32) -> (i32, i32) {
    %c0_i32 = arith.constant 0 : i32
    %c0_i32_0 = arith.constant 0 : i32
    %c0_i32_1 = arith.constant 0 : i32
    return %c0_i32, %c0_i32_0 : i32, i32
  }
  func.func @transform_7(%arg0: i32) -> (i32, i32) {
    %c0_i32 = arith.constant 0 : i32
    %c0_i32_0 = arith.constant 0 : i32
    %c0_i32_1 = arith.constant 0 : i32
    return %c0_i32, %c0_i32_0 : i32, i32
  }
  func.func @transform_8(%arg0: i32) -> (i32, i32) {
    %c0_i32 = arith.constant 0 : i32
    %c0_i32_0 = arith.constant 0 : i32
    %c0_i32_1 = arith.constant 0 : i32
    return %c0_i32, %c0_i32_0 : i32, i32
  }
  func.func @transform_9(%arg0: i32) -> (i32, i32) {
    %c0_i32 = arith.constant 0 : i32
    %c0_i32_0 = arith.constant 0 : i32
    %c0_i32_1 = arith.constant 0 : i32
    return %c0_i32, %c0_i32_0 : i32, i32
  }
  func.func @transform_10(%arg0: i32) -> (i32, i32) {
    %c0_i32 = arith.constant 0 : i32
    %c0_i32_0 = arith.constant 0 : i32
    return %arg0, %c0_i32 : i32, i32
  }
}

</mosaic_0001>

<bundles_post_ra>
// kernel: tpu_custom_call.1
= control target key start
LH: loop header
LB: loop body
LE: loop exit
PB: predicated region body
PF: predicated region fallthrough
CT: control target
= control target key end

     0   :  { %15 = vsyncpa [#allocation3], 0  ;;  %s3886_s0 = inlined_call_operand.vmem [shape: f32[32,4], index: 0, kind: input, shape index: {}]   ;;  %s3887_s1 = inlined_call_operand.hbm [shape: f32[2,32,32], index: 1, kind: input, shape index: {}]   ;;  %s3888_s2 = inlined_call_operand.hbm [shape: f32[3,16,32], index: 2, kind: input, shape index: {}]   ;;  %s3889_s3 = inlined_call_operand.vmem [shape: f32[4,4,4], index: 3, kind: input, shape index: {}]   ;;  %s3890_s4 = inlined_call_operand.hbm [shape: f32[4,4,32], index: 4, kind: input, shape index: {}]   ;;  %s3891_s5 = inlined_call_operand.hbm [shape: f32[8,32,32], index: 5, kind: input, shape index: {}]   ;;  %s3892_s6 = inlined_call_operand.hbm [shape: f32[256,128], index: 6, kind: input, shape index: {}]   ;;  %s3893_s7 = inlined_call_operand.vmem [shape: f32[16,256], index: 7, kind: input, shape index: {}]   ;;  %s3894_s8 = inlined_call_operand.vmem [shape: f32[2,16], index: 8, kind: input, shape index: {}]   ;;  %s3895_s9 = inlined_call_operand.hbm [shape: f32[8,128], index: 9, kind: input, shape index: {}]   ;;  %s3896_s10 = inlined_call_operand.hbm [shape: f32[2,128], index: 10, kind: output, shape index: {}]  }
   0x1   :  { %16 = vsyncpa [#allocation6], 0 }
   0x2   :  { %17 = vsyncpa [#allocation9], 0 }
   0x3   :  { %18 = vsyncpa [#allocation12], 0 }
   0x4   :  { %19 = vsyncpa [#allocation4], 0  ;;  %s3508_s13 = smov [#allocation5]   ;;  %s3509_s15 = smov [#allocation8]  }
   0x5   :  { %s39_s14 = sshll.u32 %s3508_s13, 4  ;;  %s65_s16 = sshll.u32 %s3509_s15, 4  ;;  %s40_s14 = int_to_ptr.vmem [resolvable:$true] %s39_s14  ;;  %s66_s16 = int_to_ptr.vmem [resolvable:$true] %s65_s16 }
   0x6   :  { %s3366_s17 = scalar_lea.vmem %s40_s14, 768  ;;  %p3371_p1 = scmp.lt.s32.totalorder %s40_s14, %s40_s14 }
   0x7   :  { %p3367_p0 = scmp.ne.s32.totalorder %s40_s14, %s3366_s17  ;;  %p3372_p2 = scmp.lt.s32.totalorder %s3366_s17, %s3366_s17 }
   0x9   :  { %p3373_p3 = por %p3372_p2, %p3371_p1 }
   0xb   :  { %p3374_p4 = pnand %p3373_p3, %p3367_p0 }
   0xd   :  { %3377 = shalt.err (!%p3374_p4)
}
   0xe   :  { %s3510_s18 = smov 128   ;;  %s3511_s19 = smov 8  }
   0xf   :  { %45 = dma.hbm_to_vmem [thread:$0]  %s3888_s2, 768, %s40_s14, [#allocation6], %s3510_s18, %s3510_s18, %s3511_s19  }
  0x10   :  { %s3386_s22 = scalar_lea.vmem %s66_s16, 4096  ;;  %p3391_p6 = scmp.lt.s32.totalorder %s66_s16, %s66_s16 }
  0x11   :  { %p3387_p5 = scmp.ne.s32.totalorder %s66_s16, %s3386_s22  ;;  %p3392_p7 = scmp.lt.s32.totalorder %s3386_s22, %s3386_s22 }
  0x13   :  { %p3393_p8 = por %p3392_p7, %p3391_p6 }
  0x15   :  { %p3394_p9 = pnand %p3393_p8, %p3387_p5 }
  0x17   :  { %3397 = shalt.err (!%p3394_p9)
}
  0x18   :  { %71 = dma.hbm_to_vmem [thread:$0]  %s3891_s5, 4096, %s66_s16, [#allocation9], %s3510_s18, %s3510_s18, %s3511_s19  }
  0x19   :  { %s3512_s25 = smov [#allocation2]   ;;  %s3513_s27 = smov [#allocation7]  }
  0x1a   :  { %s27_s26 = sshll.u32 %s3512_s25, 4  ;;  %s53_s28 = sshll.u32 %s3513_s27, 4  ;;  %s28_s26 = int_to_ptr.vmem [resolvable:$true] %s27_s26  ;;  %s54_s28 = int_to_ptr.vmem [resolvable:$true] %s53_s28 }
  0x1b   :  { %s3406_s2 = scalar_lea.vmem %s28_s26, 1024  ;;  %p3411_p11 = scmp.lt.s32.totalorder %s28_s26, %s28_s26 }
  0x1c   :  { %p3407_p10 = scmp.ne.s32.totalorder %s28_s26, %s3406_s2  ;;  %p3412_p12 = scmp.lt.s32.totalorder %s3406_s2, %s3406_s2 }
  0x1e   :  { %p3413_p13 = por %p3412_p12, %p3411_p11 }
  0x20   :  { %p3414_p0 = pnand %p3413_p13, %p3407_p10 }
  0x22   :  { %3417 = shalt.err (!%p3414_p0)
}
  0x23   :  { %33 = dma.hbm_to_vmem [thread:$0]  %s3887_s1, 1024, %s28_s26, [#allocation3], %s3510_s18, %s3510_s18, %s3511_s19  }
  0x24   :  { %s3426_s5 = scalar_lea.vmem %s54_s28, 256  ;;  %p3431_p2 = scmp.lt.s32.totalorder %s54_s28, %s54_s28 }
  0x25   :  { %p3427_p1 = scmp.ne.s32.totalorder %s54_s28, %s3426_s5  ;;  %p3432_p3 = scmp.lt.s32.totalorder %s3426_s5, %s3426_s5 }
  0x27   :  { %p3433_p4 = por %p3432_p3, %p3431_p2 }
  0x29   :  { %p3434_p5 = pnand %p3433_p4, %p3427_p1 }
  0x2b   :  { %3437 = shalt.err (!%p3434_p5)
}
  0x2c   :  { %s3514_s11 = smov 64   ;;  %s3515_s12 = smov 4  }
  0x2d   :  { %59 = dma.hbm_to_vmem [thread:$0]  %s3890_s4, 256, %s54_s28, [#allocation6], %s3514_s11, %s3514_s11, %s3515_s12  }
  0x2e   :  { %s3516_s15 = smov [#allocation10]   ;;  %s3517_s17 = smov [#allocation11]  }
  0x2f   :  { %s77_s16 = sshll.u32 %s3516_s15, 4  ;;  %s94_s20 = sshll.u32 %s3517_s17, 4  ;;  %s78_s16 = int_to_ptr.vmem [resolvable:$true] %s77_s16  ;;  %s95_s20 = int_to_ptr.vmem [resolvable:$true] %s94_s20 }
  0x30   :  { %s3446_s1 = scalar_lea.vmem %s78_s16, 4096  ;;  %p3451_p7 = scmp.lt.s32.totalorder %s78_s16, %s78_s16 }
  0x31   :  { %p3447_p6 = scmp.ne.s32.totalorder %s78_s16, %s3446_s1  ;;  %p3452_p8 = scmp.lt.s32.totalorder %s3446_s1, %s3446_s1 }
  0x33   :  { %p3453_p9 = por %p3452_p8, %p3451_p7 }
  0x35   :  { %p3454_p10 = pnand %p3453_p9, %p3447_p6 }
  0x37   :  { %3457 = shalt.err (!%p3454_p10)
}
  0x38   :  { %83 = dma.hbm_to_vmem [thread:$0]  %s3892_s6, 4096, %s78_s16, [#allocation9], %s3510_s18, %s3510_s18, %s3511_s19  }
  0x39   :  { %s3466_s4 = scalar_lea.vmem %s95_s20, 128  ;;  %p3471_p12 = scmp.lt.s32.totalorder %s95_s20, %s95_s20 }
  0x3a   :  { %p3467_p11 = scmp.ne.s32.totalorder %s95_s20, %s3466_s4  ;;  %p3472_p13 = scmp.lt.s32.totalorder %s3466_s4, %s3466_s4 }
  0x3c   :  { %p3473_p0 = por %p3472_p13, %p3471_p12 }
  0x3e   :  { %p3474_p1 = pnand %p3473_p0, %p3467_p11 }
  0x40   :  { %3477 = shalt.err (!%p3474_p1)
}
  0x41   :  { %97 = dma.hbm_to_vmem [thread:$0]  %s3895_s9, 128, %s95_s20, [#allocation12]  }
  0x42   :  { %3498 = dma.done.wait [#allocation3], 1024  }
  0x43   :  { %3499 = vsyncadd [#allocation3], 4294966272 }
  0x44   :  { %3500 = dma.done.wait [#allocation6], 1024  }
  0x45   :  { %3501 = vsyncadd [#allocation6], 4294966272 }
  0x46   :  { %3502 = dma.done.wait [#allocation9], 8192  }
  0x47   :  { %3503 = vsyncadd [#allocation9], 4294959104 }
  0x48   :  { %3504 = dma.done.wait [#allocation12], 128  }
  0x49   :  { %3505 = vsyncadd [#allocation12], 4294967168  ;;  %vm156_vm0 = vcmask 1043456   ;;  %vm143_vm1 = vcmask 31744   ;;  %v138_v0 = vld [vmem:[%s3889_s3] sm:$0xf]  ;;  %v139_v7 = vlaneseq }
  0x4a   :  { %v3615_v1 = vld [vmem:[%s3886_s0] sm:$0xff]  ;;  %v3620_v2 = vld [vmem:[%s3886_s0 + $0x8] sm:$0xff]  ;;  %3066 = vmatprep.subr.msk.mxu1 %vm156_vm0, %v138_v0  ;;  %v3628_v3 = vld [vmem:[%s3886_s0 + $0x10] sm:$0xff]  ;;  %vm249_vm2 = vcmask 261120   ;;  %s3519_s15 = smov 32   ;;  %vm2568_vm3 = vcmask 523264  }
  0x4b   :  { %3068 = vmatprep.mubr.msk.f32.mxu1 %vm143_vm1, %v3615_v1  ;;  %3067 = vmatpush3.msk.msra.mxu1 %vm156_vm0, %v138_v0  ;;  %v3638_v4 = vld [vmem:[%s3886_s0 + $0x18] sm:$0xff]  ;;  %v2793_v5 = vld [vmem:[%s3889_s3 + $0x8] sm:$0xf]  ;;  %v121_v6 = vld [vmem:[#allocation2] sm:$0xff]  ;;  %v3649_v8 = vshrl.u32 %v139_v7, 7  ;;  %vm2571_vm4 = vcmask 785408  }
  0x4c   :  { %3069 = vmatmul.mubr.msk.f32.vlgmr.msra.gmra.mxu1 %vm143_vm1, %v3620_v2  ;;  %3088 = vmatprep.subr.msk.mxu0 %vm156_vm0, %v2793_v5  ;;  %v3652_v10 = vld [vmem:[#allocation11] sm:$0xff]  ;;  %v122_v24 = vld [vmem:[#allocation2 + $0x8] sm:$0xff]  ;;  %v123_v26 = vld [vmem:[#allocation2 + $0x10] sm:$0xff]  ;;  %vm2583_vm5 = vcmask 130048  }
  0x4d   :  { %3071 = vmatprep.mubr.msk.f32.mxu1 %vm143_vm1, %v3628_v3  ;;  %3089 = vmatpush3.msk.msra.mxu0 %vm156_vm0, %v2793_v5  ;;  %v141_v9 = vsub.s32 0, %v3649_v8  ;;  %v2792_v25 = vld [vmem:[%s3889_s3 + $0x4] sm:$0xf]  ;;  %v124_v27 = vld [vmem:[#allocation2 + $0x18] sm:$0xff]  ;;  %v127_v33 = vld [vmem:[#allocation2 + $0x28] sm:$0xff]  ;;  %v756_v57 = vsub.s32 1, %v3649_v8 }
  0x4e   :  { %3126 = vmatprep.subr.mxu0 %v3638_v4  ;;  %v126_v32 = vld [vmem:[#allocation2 + $0x20] sm:$0xff]  ;;  %v128_v34 = vld [vmem:[#allocation2 + $0x30] sm:$0xff]  ;;  %v129_v35 = vld [vmem:[#allocation2 + $0x38] sm:$0xff] }
  0x4f   :  { %v142_v11 = vrot.slane %v3652_v10, %v141_v9  ;;  %v2808_v37 = vld [vmem:[%s3889_s3 + $0xc] sm:$0xf]  ;;  %v855_v40 = vld [vmem:[#allocation7 + $0x8] sm:$0xf]  ;;  %v853_v43 = vld [vmem:[#allocation7 + $0x4] sm:$0xf]  ;;  %v757_v60 = vrot.slane %v3652_v10, %v756_v57 }
  0x50   :  { %3072 = vmatmul.mubr.msk.f32.gmra.mxu1 %vm143_vm1, %v3638_v4  ;;  %v766_v55 = vld [vmem:[#allocation7] sm:$0xf]  ;;  %v1130_v56 = vld [vmem:[#allocation7 + $0xc] sm:$0xf]  ;;  %s3518_s3 = smov 96  }
  0x51   :  { %3082 = vmatprep.mubr.msk.f32.mxu1 %vm249_vm2, %v121_v6 }
 0x10c   :  { %v3070_v12 = vpop.f32.mrf.mxu1 }
 0x10d   :  { %v232_v13 = vadd.f32 %v3070_v12, %v142_v11 }
 0x10e   :  { %v226_v14 = vpop.f32.mrf.mxu1 }
 0x10f   :  { %v227_v15 = vadd.f32 %v226_v14, %v142_v11  ;;  %v246_v19 = vmax.f32 %v232_v13, 0.0 }
 0x110   :  { %v3073_v16 = vpop.f32.mrf.mxu1 }
 0x111   :  { %v245_v17 = vmax.f32 %v227_v15, 0.0  ;;  %v242_v18 = vadd.f32 %v3073_v16, %v142_v11 }
 0x112   :  { %v236_v20 = vpop.f32.mrf.mxu1 }
 0x113   :  { %v248_v21 = vmax.f32 %v242_v18, 0.0  ;;  %v237_v22 = vadd.f32 %v236_v20, %v142_v11  ;;  %3090 = vmatprep.mubr.msk.f32.mxu0 %vm143_vm1, %v245_v17 }
 0x114   :  { %3091 = vmatmul.mubr.msk.f32.vlgmr.msra.gmra.mxu0 %vm143_vm1, %v246_v19 }
 0x115   :  { %v247_v23 = vmax.f32 %v237_v22, 0.0  ;;  %3074 = vmatprep.subr.mxu1 %v248_v21  ;;  %3127 = vmatpush3.msra.mxu0 %v3638_v4 }
 0x116   :  { %3075 = vmatpush3.msra.mxu1 %v248_v21  ;;  %3128 = vmatprep.subr.mxu0 %v3628_v3 }
 0x117   :  { %3076 = vmatprep.subr.mxu1 %v247_v23  ;;  %3093 = vmatprep.mubr.msk.f32.mxu0 %vm143_vm1, %v247_v23 }
 0x118   :  { %3077 = vmatpush3.msra.mxu1 %v247_v23  ;;  %3094 = vmatmul.mubr.msk.f32.gmra.mxu0 %vm143_vm1, %v248_v21 }
 0x119   :  { %3078 = vmatprep.subr.mxu1 %v246_v19  ;;  %3129 = vmatpush3.msra.mxu0 %v3628_v3 }
 0x11a   :  { %3079 = vmatpush3.msra.mxu1 %v246_v19  ;;  %3130 = vmatprep.subr.mxu0 %v3620_v2 }
 0x11b   :  { %3080 = vmatprep.subr.mxu1 %v245_v17  ;;  %3131 = vmatpush3.msra.mxu0 %v3620_v2 }
 0x11c   :  { %3081 = vmatpush3.msra.mxu1 %v245_v17  ;;  %3132 = vmatprep.subr.mxu0 %v3615_v1 }
 0x11d   :  { %3083 = vmatmul.mubr.msk.f32.vlgmr.msra.gmra.mxu1 %vm249_vm2, %v122_v24  ;;  %3096 = vmatprep.subr.msk.mxu1 %vm156_vm0, %v2792_v25 }
 0x11e   :  { %3097 = vmatpush3.msk.msra.mxu1 %vm156_vm0, %v2792_v25  ;;  %3085 = vmatprep.mubr.msk.f32.mxu1 %vm249_vm2, %v123_v26  ;;  %v1350_v25 = vld [vmem:[#allocation8 + $0x18] sm:$0xff] }
 0x11f   :  { %3104 = vmatprep.subr.mxu1 %v248_v21  ;;  %3133 = vmatpush3.msra.mxu0 %v3615_v1 }
 0x120   :  { %3134 = vmatprep.mubr.msk.f32.mxu0 %vm249_vm2, %v121_v6  ;;  %3148 = vmatprep.subr.msk.mxu0 %vm156_vm0, %v853_v43 }
 0x121   :  { %3086 = vmatmul.mubr.msk.f32.gmra.mxu1 %vm249_vm2, %v124_v27  ;;  %3135 = vmatmul.mubr.msk.f32.vlgmr.msra.gmra.mxu0 %vm249_vm2, %v122_v24 }
 0x122   :  { %3137 = vmatprep.mubr.msk.f32.mxu0 %vm249_vm2, %v123_v26  ;;  %3149 = vmatpush3.msk.msra.mxu0 %vm156_vm0, %v853_v43  ;;  %v1349_v26 = vld [vmem:[#allocation8 + $0x10] sm:$0xff] }
 0x123   :  { %3170 = vmatprep.subr.msk.mxu0 %vm156_vm0, %v1130_v56 }
 0x125   :  { %3138 = vmatmul.mubr.msk.f32.gmra.mxu0 %vm249_vm2, %v124_v27  ;;  %v1348_v27 = vld [vmem:[#allocation8 + $0x8] sm:$0xff] }
 0x1d4   :  { %v3092_v36 = vpop.f32.mrf.mxu0 }
 0x1d6   :  { %v432_v38 = vpop.f32.mrf.mxu0 }
 0x1d8   :  { %v3095_v39 = vpop.f32.mrf.mxu0 }
 0x1da   :  { %v442_v41 = vpop.f32.mrf.mxu0 }
 0x1dd   :  { %v3084_v28 = vpop.f32.mrf.mxu1 }
 0x1df   :  { %v328_v29 = vpop.f32.mrf.mxu1 }
 0x1e0   :  { %3098 = vmatprep.mubr.msk.f32.mxu1 %vm143_vm1, %v328_v29 }
 0x1e1   :  { %v3087_v30 = vpop.f32.mrf.mxu1  ;;  %3099 = vmatmul.mubr.msk.f32.vlgmr.msra.gmra.mxu1 %vm143_vm1, %v3084_v28  ;;  %v3136_v42 = vpop.f32.mrf.mxu0  ;;  %v1347_v28 = vld [vmem:[#allocation8] sm:$0xff] }
 0x1e2   :  { %3105 = vmatpush3.msra.mxu1 %v248_v21 }
 0x1e3   :  { %3106 = vmatprep.subr.mxu1 %v247_v23  ;;  %v338_v31 = vpop.f32.mrf.mxu1  ;;  %v833_v44 = vpop.f32.mrf.mxu0 }
 0x1e4   :  { %3107 = vmatpush3.msra.mxu1 %v247_v23  ;;  %3101 = vmatprep.mubr.msk.f32.mxu1 %vm143_vm1, %v338_v31 }
 0x1e5   :  { %3108 = vmatprep.subr.mxu1 %v246_v19  ;;  %3102 = vmatmul.mubr.msk.f32.gmra.mxu1 %vm143_vm1, %v3087_v30  ;;  %v3139_v45 = vpop.f32.mrf.mxu0 }
 0x1e6   :  { %3109 = vmatpush3.msra.mxu1 %v246_v19  ;;  %3112 = vmatprep.mubr.msk.f32.mxu1 %vm249_vm2, %v126_v32 }
 0x1e7   :  { %3110 = vmatprep.subr.mxu1 %v245_v17  ;;  %3150 = vmatprep.mubr.msk.f32.mxu0 %vm143_vm1, %v833_v44  ;;  %v843_v46 = vpop.f32.mrf.mxu0 }
 0x1e8   :  { %3111 = vmatpush3.msra.mxu1 %v245_v17  ;;  %3151 = vmatmul.mubr.msk.f32.vlgmr.msra.gmra.mxu0 %vm143_vm1, %v3136_v42 }
 0x1e9   :  { %3113 = vmatmul.mubr.msk.f32.vlgmr.msra.gmra.mxu1 %vm249_vm2, %v127_v33  ;;  %3118 = vmatprep.subr.msk.mxu1 %vm156_vm0, %v2808_v37 }
 0x1ea   :  { %3115 = vmatprep.mubr.msk.f32.mxu1 %vm249_vm2, %v128_v34  ;;  %3119 = vmatpush3.msk.msra.mxu1 %vm156_vm0, %v2808_v37 }
 0x1eb   :  { %3140 = vmatprep.subr.msk.mxu1 %vm156_vm0, %v855_v40  ;;  %3153 = vmatprep.mubr.msk.f32.mxu0 %vm143_vm1, %v843_v46 }
 0x1ec   :  { %3154 = vmatmul.mubr.msk.f32.gmra.mxu0 %vm143_vm1, %v3139_v45 }
 0x1ed   :  { %3116 = vmatmul.mubr.msk.f32.gmra.mxu1 %vm249_vm2, %v129_v35  ;;  %3171 = vmatpush3.msk.msra.mxu0 %vm156_vm0, %v1130_v56 }
 0x1ee   :  { %3186 = vmatprep.subr.mxu0 %v1350_v25 }
 0x2a1   :  { %v3100_v47 = vpop.f32.mrf.mxu1 }
 0x2a2   :  { %v538_v58 = vadd.f32 %v3100_v47, %v3092_v36 }
 0x2a3   :  { %v532_v48 = vpop.f32.mrf.mxu1 }
 0x2a4   :  { %v533_v61 = vadd.f32 %v532_v48, %v432_v38 }
 0x2a5   :  { %v3103_v49 = vpop.f32.mrf.mxu1 }
 0x2a6   :  { %v548_v0 = vadd.f32 %v3103_v49, %v3095_v39 }
 0x2a7   :  { %v542_v50 = vpop.f32.mrf.mxu1 }
 0x2a8   :  { %v3152_v29 = vpop.f32.mrf.mxu0 }
 0x2a9   :  { %v3114_v51 = vpop.f32.mrf.mxu1 }
 0x2aa   :  { %v1025_v30 = vpop.f32.mrf.mxu0 }
 0x2ab   :  { %v629_v52 = vpop.f32.mrf.mxu1 }
 0x2ac   :  { %3120 = vmatprep.mubr.msk.f32.mxu1 %vm143_vm1, %v629_v52  ;;  %v3155_v31 = vpop.f32.mrf.mxu0 }
 0x2ad   :  { %v3117_v53 = vpop.f32.mrf.mxu1  ;;  %3121 = vmatmul.mubr.msk.f32.vlgmr.msra.gmra.mxu1 %vm143_vm1, %v3114_v51 }
 0x2ae   :  { %3141 = vmatpush3.msk.msra.mxu1 %vm156_vm0, %v855_v40 }
 0x2af   :  { %v639_v54 = vpop.f32.mrf.mxu1  ;;  %3156 = vmatprep.subr.mxu1 %v3638_v4 }
 0x2b0   :  { %3123 = vmatprep.mubr.msk.f32.mxu1 %vm143_vm1, %v639_v54 }
 0x2b1   :  { %3124 = vmatmul.mubr.msk.f32.gmra.mxu1 %vm143_vm1, %v3117_v53 }
 0x2b2   :  { %3142 = vmatprep.mubr.msk.f32.mxu1 %vm143_vm1, %v3615_v1 }
 0x2b5   :  { %3143 = vmatmul.mubr.msk.f32.vlgmr.msra.gmra.mxu1 %vm143_vm1, %v3620_v2 }
 0x2b6   :  { %3157 = vmatpush3.msra.mxu1 %v3638_v4  ;;  %3145 = vmatprep.mubr.msk.f32.mxu1 %vm143_vm1, %v3628_v3 }
 0x2b7   :  { %3158 = vmatprep.subr.mxu1 %v3628_v3 }
 0x2b8   :  { %3159 = vmatpush3.msra.mxu1 %v3628_v3 }
 0x2b9   :  { %3146 = vmatmul.mubr.msk.f32.gmra.mxu1 %vm143_vm1, %v3638_v4  ;;  %3160 = vmatprep.subr.mxu1 %v3620_v2  ;;  %v543_v4 = vadd.f32 %v542_v50, %v442_v41 }
 0x2ba   :  { %3161 = vmatpush3.msra.mxu1 %v3620_v2  ;;  %3164 = vmatprep.mubr.msk.f32.mxu1 %vm249_vm2, %v126_v32 }
 0x2bb   :  { %3162 = vmatprep.subr.mxu1 %v3615_v1 }
 0x2bc   :  { %3163 = vmatpush3.msra.mxu1 %v3615_v1 }
 0x2bd   :  { %3165 = vmatmul.mubr.msk.f32.vlgmr.msra.gmra.mxu1 %vm249_vm2, %v127_v33  ;;  %3178 = vmatprep.subr.msk.mxu1 %vm156_vm0, %v766_v55  ;;  %v1035_v33 = vpop.f32.mrf.mxu0 }
 0x2be   :  { %3167 = vmatprep.mubr.msk.f32.mxu1 %vm249_vm2, %v128_v34  ;;  %3179 = vmatpush3.msk.msra.mxu1 %vm156_vm0, %v766_v55  ;;  %v1337_v34 = vsub.s32 2, %v3649_v8 }
 0x2c0   :  { %v1338_v40 = vrot.slane %v3652_v10, %v1337_v34  ;;  %v1872_v34 = vld [vmem:[#allocation8 + $0x60] sm:$0xff] }
 0x2c1   :  { %3168 = vmatmul.mubr.msk.f32.gmra.mxu1 %vm249_vm2, %v129_v35 }
 0x36d   :  { %v3122_v59 = vpop.f32.mrf.mxu1 }
 0x36e   :  { %v751_v62 = vadd.f32 %v3122_v59, %v538_v58 }
 0x36f   :  { %v731_v63 = vpop.f32.mrf.mxu1 }
 0x370   :  { %v750_v1 = vadd.f32 %v731_v63, %v533_v61  ;;  %v759_v2 = vadd.f32 %v757_v60, %v751_v62  ;;  %v3755_v63 = vld [vmem:[#allocation5] sm:$0xff] }
 0x371   :  { %v3125_v3 = vpop.f32.mrf.mxu1 }
 0x372   :  { %v758_v5 = vadd.f32 %v757_v60, %v750_v1  ;;  %v753_v6 = vadd.f32 %v3125_v3, %v548_v0  ;;  %v763_v12 = vmax.f32 %v759_v2, 0.0  ;;  %v3757_v0 = vld [vmem:[#allocation5 + $0x10] sm:$0xff]  ;;  %v1353_v1 = vsub.s32 3, %v3649_v8 }
 0x373   :  { %v741_v7 = vpop.f32.mrf.mxu1 }
 0x374   :  { %v762_v9 = vmax.f32 %v758_v5, 0.0  ;;  %v752_v11 = vadd.f32 %v741_v7, %v543_v4  ;;  %v761_v13 = vadd.f32 %v757_v60, %v753_v6  ;;  %v1354_v4 = vrot.slane %v3652_v10, %v1353_v1 }
 0x375   :  { %v3144_v14 = vpop.f32.mrf.mxu1 }
 0x376   :  { %v760_v15 = vadd.f32 %v757_v60, %v752_v11  ;;  %3180 = vmatprep.mubr.msk.f32.mxu1 %vm143_vm1, %v762_v9  ;;  %v765_v18 = vmax.f32 %v761_v13, 0.0  ;;  %v1031_v35 = vadd.f32 %v3152_v29, %v3144_v14 }
 0x377   :  { %v925_v16 = vpop.f32.mrf.mxu1  ;;  %3181 = vmatmul.mubr.msk.f32.vlgmr.msra.gmra.mxu1 %vm143_vm1, %v763_v12 }
 0x378   :  { %v764_v17 = vmax.f32 %v760_v15, 0.0  ;;  %v1026_v38 = vadd.f32 %v1025_v30, %v925_v16 }
 0x379   :  { %v3147_v19 = vpop.f32.mrf.mxu1 }
 0x37a   :  { %3183 = vmatprep.mubr.msk.f32.mxu1 %vm143_vm1, %v764_v17  ;;  %v1041_v42 = vadd.f32 %v3155_v31, %v3147_v19  ;;  %v3779_v17 = vld [vmem:[#allocation5 + $0x8] sm:$0xff]  ;;  %v1627_v19 = vld [vmem:[#allocation8 + $0x58] sm:$0xff] }
 0x37b   :  { %v935_v20 = vpop.f32.mrf.mxu1  ;;  %3184 = vmatmul.mubr.msk.f32.gmra.mxu1 %vm143_vm1, %v765_v18  ;;  %v3781_v18 = vld [vmem:[#allocation5 + $0x18] sm:$0xff] }
 0x37c   :  { %v1036_v47 = vadd.f32 %v1035_v33, %v935_v20  ;;  %3208 = vmatprep.mubr.msk.f32.mxu1 %vm249_vm2, %v3755_v63  ;;  %v1541_v20 = vld [vmem:[#allocation8 + $0x38] sm:$0xff]  ;;  %v1873_v33 = vld [vmem:[#allocation8 + $0x68] sm:$0xff] }
 0x37d   :  { %v3166_v21 = vpop.f32.mrf.mxu1 }
 0x37f   :  { %v1110_v22 = vpop.f32.mrf.mxu1 }
 0x380   :  { %3172 = vmatprep.mubr.msk.f32.mxu0 %vm143_vm1, %v1110_v22  ;;  %v1540_v22 = vld [vmem:[#allocation8 + $0x30] sm:$0xff] }
 0x381   :  { %v3169_v23 = vpop.f32.mrf.mxu1  ;;  %3173 = vmatmul.mubr.msk.f32.vlgmr.msra.gmra.mxu0 %vm143_vm1, %v3166_v21  ;;  %v1626_v21 = vld [vmem:[#allocation8 + $0x50] sm:$0xff] }
 0x382   :  { %3187 = vmatpush3.msra.mxu0 %v1350_v25  ;;  %v1624_v25 = vld [vmem:[#allocation8 + $0x40] sm:$0xff] }
 0x383   :  { %v1120_v24 = vpop.f32.mrf.mxu1  ;;  %3188 = vmatprep.subr.mxu0 %v1349_v26 }
 0x384   :  { %3175 = vmatprep.mubr.msk.f32.mxu0 %vm143_vm1, %v1120_v24  ;;  %3189 = vmatpush3.msra.mxu0 %v1349_v26  ;;  %v1539_v24 = vld [vmem:[#allocation8 + $0x28] sm:$0xff]  ;;  %v1538_v26 = vld [vmem:[#allocation8 + $0x20] sm:$0xff] }
 0x385   :  { %3176 = vmatmul.mubr.msk.f32.gmra.mxu0 %vm143_vm1, %v3169_v23  ;;  %3190 = vmatprep.subr.mxu0 %v1348_v27  ;;  %v1625_v23 = vld [vmem:[#allocation8 + $0x48] sm:$0xff] }
 0x386   :  { %3191 = vmatpush3.msra.mxu0 %v1348_v27  ;;  %v1875_v27 = vld [vmem:[#allocation8 + $0x78] sm:$0xff] }
 0x387   :  { %3192 = vmatprep.subr.mxu0 %v1347_v28 }
 0x388   :  { %3193 = vmatpush3.msra.mxu0 %v1347_v28 }
 0x437   :  { %v3182_v32 = vpop.f32.mrf.mxu1 }
 0x439   :  { %v1316_v36 = vpop.f32.mrf.mxu1 }
 0x43b   :  { %v3185_v45 = vpop.f32.mrf.mxu1 }
 0x43d   :  { %v1326_v55 = vpop.f32.mrf.mxu1 }
 0x441   :  { %v3174_v37 = vpop.f32.mrf.mxu0 }
 0x442   :  { %v1232_v39 = vadd.f32 %v3174_v37, %v1031_v35  ;;  %v3798_v35 = vld [vmem:[#allocation5 + $0x20] sm:$0xff]  ;;  %v2131_v37 = vld [vmem:[#allocation8 + $0xd8] sm:$0xff] }
 0x443   :  { %v1212_v41 = vpop.f32.mrf.mxu0 }
 0x444   :  { %v1322_v43 = vadd.f32 %v3182_v32, %v1232_v39  ;;  %v1231_v44 = vadd.f32 %v1212_v41, %v1026_v38  ;;  %v1874_v32 = vld [vmem:[#allocation8 + $0x70] sm:$0xff]  ;;  %v2129_v39 = vld [vmem:[#allocation8 + $0xc8] sm:$0xff] }
 0x445   :  { %v3177_v46 = vpop.f32.mrf.mxu0  ;;  %v2130_v38 = vld [vmem:[#allocation8 + $0xd0] sm:$0xff] }
 0x446   :  { %v1317_v48 = vadd.f32 %v1316_v36, %v1231_v44  ;;  %v1234_v49 = vadd.f32 %v3177_v46, %v1041_v42  ;;  %v1340_v50 = vadd.f32 %v1338_v40, %v1322_v43  ;;  %v3801_v36 = vld [vmem:[#allocation5 + $0x28] sm:$0xff]  ;;  %v2050_v46 = vld [vmem:[#allocation8 + $0xb0] sm:$0xff] }
 0x447   :  { %v1222_v51 = vpop.f32.mrf.mxu0 }
 0x448   :  { %v1339_v52 = vadd.f32 %v1338_v40, %v1317_v48  ;;  %v1332_v53 = vadd.f32 %v3185_v45, %v1234_v49  ;;  %v1233_v54 = vadd.f32 %v1222_v51, %v1036_v47  ;;  %v3741_v58 = vmax.f32 %v1340_v50, 0.0  ;;  %v2051_v45 = vld [vmem:[#allocation8 + $0xb8] sm:$0xff]  ;;  %v2049_v48 = vld [vmem:[#allocation8 + $0xa8] sm:$0xff]  ;;  %v2048_v50 = vld [vmem:[#allocation8 + $0xa0] sm:$0xff] }
 0x44a   :  { %v3739_v56 = vmax.f32 %v1339_v52, 0.0  ;;  %v1327_v57 = vadd.f32 %v1326_v55, %v1233_v54  ;;  %v1342_v59 = vadd.f32 %v1338_v40, %v1332_v53 }
 0x44c   :  { %v1341_v60 = vadd.f32 %v1338_v40, %v1327_v57  ;;  %3194 = vmatprep.mubr.msk.f32.mxu0 %vm249_vm2, %v3739_v56  ;;  %v3749_v62 = vmax.f32 %v1342_v59, 0.0  ;;  %v2128_v40 = vld [vmem:[#allocation8 + $0xc0] sm:$0xff]  ;;  %v1961_v59 = vsub.s32 4, %v3649_v8 }
 0x44d   :  { %3195 = vmatmul.mubr.msk.f32.vlgmr.msra.gmra.mxu0 %vm249_vm2, %v3741_v58 }
 0x44e   :  { %v3747_v61 = vmax.f32 %v1341_v60, 0.0 }
 0x450   :  { %3197 = vmatprep.mubr.msk.f32.mxu0 %vm249_vm2, %v3747_v61 }
 0x451   :  { %3198 = vmatmul.mubr.msk.f32.gmra.mxu0 %vm249_vm2, %v3749_v62 }
 0x452   :  { %3219 = vmatprep.mubr.msk.f32.mxu0 %vm249_vm2, %v3757_v0 }
 0x50d   :  { %v3196_v2 = vpop.f32.mrf.mxu0 }
 0x50e   :  { %v1439_v9 = vadd.f32 %v3196_v2, %v1354_v4 }
 0x50f   :  { %v1433_v3 = vpop.f32.mrf.mxu0 }
 0x510   :  { %v1434_v13 = vadd.f32 %v1433_v3, %v1354_v4  ;;  %v3767_v15 = vmax.f32 %v1439_v9, 0.0  ;;  %v1971_v3 = vld [vmem:[#allocation8 + $0x98] sm:$0xff]  ;;  %v2372_v9 = vld [vmem:[#allocation8 + $0xf0] sm:$0xff] }
 0x511   :  { %v3199_v5 = vpop.f32.mrf.mxu0 }
 0x512   :  { %v1449_v6 = vadd.f32 %v3199_v5, %v1354_v4  ;;  %v3773_v16 = vmax.f32 %v1434_v13, 0.0 }
 0x513   :  { %v1443_v7 = vpop.f32.mrf.mxu0 }
 0x514   :  { %v1455_v11 = vmax.f32 %v1449_v6, 0.0  ;;  %v1444_v12 = vadd.f32 %v1443_v7, %v1354_v4 }
 0x516   :  { %v3765_v14 = vmax.f32 %v1444_v12, 0.0  ;;  %3200 = vmatprep.subr.mxu1 %v1455_v11  ;;  %3211 = vmatprep.subr.mxu0 %v1455_v11  ;;  %v2370_v12 = vld [vmem:[#allocation8 + $0xe0] sm:$0xff] }
 0x517   :  { %3201 = vmatpush3.msra.mxu1 %v1455_v11  ;;  %3212 = vmatpush3.msra.mxu0 %v1455_v11 }
 0x518   :  { %3202 = vmatprep.subr.mxu1 %v3765_v14  ;;  %3213 = vmatprep.subr.mxu0 %v3765_v14 }
 0x519   :  { %3203 = vmatpush3.msra.mxu1 %v3765_v14  ;;  %3214 = vmatpush3.msra.mxu0 %v3765_v14 }
 0x51a   :  { %3204 = vmatprep.subr.mxu1 %v3767_v15  ;;  %3215 = vmatprep.subr.mxu0 %v3767_v15 }
 0x51b   :  { %3205 = vmatpush3.msra.mxu1 %v3767_v15  ;;  %3216 = vmatpush3.msra.mxu0 %v3767_v15 }
 0x51c   :  { %3206 = vmatprep.subr.mxu1 %v3773_v16  ;;  %3217 = vmatprep.subr.mxu0 %v3773_v16 }
 0x51d   :  { %3207 = vmatpush3.msra.mxu1 %v3773_v16  ;;  %3218 = vmatpush3.msra.mxu0 %v3773_v16 }
 0x51e   :  { %3209 = vmatmul.mubr.msk.f32.vlgmr.msra.gmra.mxu1 %vm249_vm2, %v3779_v17  ;;  %3220 = vmatmul.mubr.msk.f32.vlgmr.msra.gmra.mxu0 %vm249_vm2, %v3781_v18 }
 0x51f   :  { %3222 = vmatprep.subr.mxu1 %v1627_v19  ;;  %3233 = vmatprep.subr.mxu0 %v1541_v20 }
 0x520   :  { %3223 = vmatpush3.msra.mxu1 %v1627_v19  ;;  %3234 = vmatpush3.msra.mxu0 %v1541_v20 }
 0x521   :  { %3224 = vmatprep.subr.mxu1 %v1626_v21  ;;  %3235 = vmatprep.subr.mxu0 %v1540_v22 }
 0x522   :  { %3225 = vmatpush3.msra.mxu1 %v1626_v21  ;;  %3236 = vmatpush3.msra.mxu0 %v1540_v22 }
 0x523   :  { %3226 = vmatprep.subr.mxu1 %v1625_v23  ;;  %3237 = vmatprep.subr.mxu0 %v1539_v24 }
 0x524   :  { %3227 = vmatpush3.msra.mxu1 %v1625_v23  ;;  %3238 = vmatpush3.msra.mxu0 %v1539_v24 }
 0x525   :  { %3228 = vmatprep.subr.mxu1 %v1624_v25  ;;  %3239 = vmatprep.subr.mxu0 %v1538_v26 }
 0x526   :  { %3229 = vmatpush3.msra.mxu1 %v1624_v25  ;;  %3240 = vmatpush3.msra.mxu0 %v1538_v26 }
 0x527   :  { %3244 = vmatprep.subr.mxu1 %v1455_v11  ;;  %3255 = vmatprep.subr.mxu0 %v1875_v27 }
 0x5de   :  { %v3210_v28 = vpop.f32.mrf.mxu1  ;;  %v3221_v29 = vpop.f32.mrf.mxu0 }
 0x5e0   :  { %v1528_v30 = vpop.f32.mrf.mxu1  ;;  %v1614_v31 = vpop.f32.mrf.mxu0 }
 0x5e1   :  { %3230 = vmatprep.mubr.msk.f32.mxu1 %vm249_vm2, %v1614_v31  ;;  %3241 = vmatprep.mubr.msk.f32.mxu0 %vm249_vm2, %v1528_v30 }
 0x5e2   :  { %3231 = vmatmul.mubr.msk.f32.vlgmr.msra.gmra.mxu1 %vm249_vm2, %v3221_v29  ;;  %3242 = vmatmul.mubr.msk.f32.vlgmr.msra.gmra.mxu0 %vm249_vm2, %v3210_v28 }
 0x5e3   :  { %3245 = vmatpush3.msra.mxu1 %v1455_v11  ;;  %3256 = vmatpush3.msra.mxu0 %v1875_v27  ;;  %v2371_v11 = vld [vmem:[#allocation8 + $0xe8] sm:$0xff] }
 0x5e4   :  { %3246 = vmatprep.subr.mxu1 %v3765_v14  ;;  %3257 = vmatprep.subr.mxu0 %v1874_v32 }
 0x5e5   :  { %3247 = vmatpush3.msra.mxu1 %v3765_v14  ;;  %3258 = vmatpush3.msra.mxu0 %v1874_v32 }
 0x5e6   :  { %3248 = vmatprep.subr.mxu1 %v3767_v15  ;;  %3259 = vmatprep.subr.mxu0 %v1873_v33 }
 0x5e7   :  { %3249 = vmatpush3.msra.mxu1 %v3767_v15  ;;  %3260 = vmatpush3.msra.mxu0 %v1873_v33 }
 0x5e8   :  { %3250 = vmatprep.subr.mxu1 %v3773_v16  ;;  %3261 = vmatprep.subr.mxu0 %v1872_v34 }
 0x5e9   :  { %3251 = vmatpush3.msra.mxu1 %v3773_v16  ;;  %3252 = vmatprep.mubr.msk.f32.mxu1 %vm249_vm2, %v3798_v35 }
 0x5ea   :  { %3262 = vmatpush3.msra.mxu0 %v1872_v34  ;;  %3253 = vmatmul.mubr.msk.f32.vlgmr.msra.gmra.mxu1 %vm249_vm2, %v3801_v36  ;;  %v3520_v34 = vmov 0.0  }
 0x5eb   :  { %3266 = vmatprep.subr.mxu1 %v3749_v62  ;;  %3277 = vmatprep.subr.mxu0 %v3749_v62 }
 0x5ec   :  { %3267 = vmatpush3.msra.mxu1 %v3749_v62  ;;  %3274 = vmatprep.mubr.msk.f32.mxu1 %vm249_vm2, %v3755_v63 }
 0x5ed   :  { %3268 = vmatprep.subr.mxu1 %v3747_v61 }
 0x5ee   :  { %3269 = vmatpush3.msra.mxu1 %v3747_v61 }
 0x5ef   :  { %3270 = vmatprep.subr.mxu1 %v3741_v58 }
 0x5f0   :  { %3271 = vmatpush3.msra.mxu1 %v3741_v58 }
 0x5f1   :  { %3272 = vmatprep.subr.mxu1 %v3739_v56 }
 0x5f2   :  { %3273 = vmatpush3.msra.mxu1 %v3739_v56 }
 0x5f3   :  { %3288 = vmatprep.subr.mxu1 %v2131_v37  ;;  %3275 = vmatmul.mubr.msk.f32.vlgmr.msra.gmra.mxu1 %vm249_vm2, %v3779_v17 }
 0x5f4   :  { %3289 = vmatpush3.msra.mxu1 %v2131_v37 }
 0x5f5   :  { %3290 = vmatprep.subr.mxu1 %v2130_v38 }
 0x5f6   :  { %3291 = vmatpush3.msra.mxu1 %v2130_v38  ;;  %v2576_v38 = vld [vmem:[%s3893_s7 + $0x10] sm:$0xff] }
 0x5f7   :  { %3292 = vmatprep.subr.mxu1 %v2129_v39 }
 0x5f8   :  { %3293 = vmatpush3.msra.mxu1 %v2129_v39 }
 0x5f9   :  { %3294 = vmatprep.subr.mxu1 %v2128_v40 }
 0x5fa   :  { %3295 = vmatpush3.msra.mxu1 %v2128_v40 }
 0x5fb   :  { %3310 = vmatprep.subr.mxu1 %v3749_v62 }
 0x6a2   :  { %v3232_v41 = vpop.f32.mrf.mxu1  ;;  %v3243_v51 = vpop.f32.mrf.mxu0 }
 0x6a3   :  { %v1787_v2 = vadd.f32 %v3243_v51, %v3232_v41  ;;  %v2577_v41 = vld [vmem:[%s3893_s7 + $0x18] sm:$0xff] }
 0x6a4   :  { %v1700_v42 = vpop.f32.mrf.mxu1  ;;  %v1781_v52 = vpop.f32.mrf.mxu0 }
 0x6a5   :  { %v1782_v57 = vadd.f32 %v1781_v52, %v1700_v42 }
 0x6aa   :  { %v3254_v43 = vpop.f32.mrf.mxu1 }
 0x6ac   :  { %v1862_v44 = vpop.f32.mrf.mxu1 }
 0x6ad   :  { %3263 = vmatprep.mubr.msk.f32.mxu0 %vm249_vm2, %v1862_v44 }
 0x6ae   :  { %3264 = vmatmul.mubr.msk.f32.vlgmr.msra.gmra.mxu0 %vm249_vm2, %v3254_v43 }
 0x6af   :  { %3278 = vmatpush3.msra.mxu0 %v3749_v62  ;;  %3285 = vmatprep.mubr.msk.f32.mxu0 %vm249_vm2, %v3757_v0  ;;  %v1962_v0 = vrot.slane %v3652_v10, %v1961_v59  ;;  %v2673_v59 = vld [vmem:[#allocation10 + $0x78] sm:$0xff] }
 0x6b0   :  { %3279 = vmatprep.subr.mxu0 %v3747_v61 }
 0x6b1   :  { %3280 = vmatpush3.msra.mxu0 %v3747_v61 }
 0x6b2   :  { %3281 = vmatprep.subr.mxu0 %v3741_v58 }
 0x6b3   :  { %3282 = vmatpush3.msra.mxu0 %v3741_v58  ;;  %v3276_v47 = vpop.f32.mrf.mxu1 }
 0x6b4   :  { %3283 = vmatprep.subr.mxu0 %v3739_v56 }
 0x6b5   :  { %3284 = vmatpush3.msra.mxu0 %v3739_v56  ;;  %v2038_v49 = vpop.f32.mrf.mxu1 }
 0x6b6   :  { %3286 = vmatmul.mubr.msk.f32.vlgmr.msra.gmra.mxu0 %vm249_vm2, %v3781_v18  ;;  %3299 = vmatprep.subr.mxu0 %v2051_v45  ;;  %v2540_v18 = vsub.s32 5, %v3649_v8 }
 0x6b7   :  { %3300 = vmatpush3.msra.mxu0 %v2051_v45  ;;  %3307 = vmatprep.mubr.msk.f32.mxu0 %vm249_vm2, %v2038_v49  ;;  %v2575_v49 = vld [vmem:[%s3893_s7 + $0x8] sm:$0xff] }
 0x6b8   :  { %3301 = vmatprep.subr.mxu0 %v2050_v46  ;;  %v2541_v25 = vrot.slane %v3652_v10, %v2540_v18  ;;  %v2677_v18 = vld [vmem:[#allocation10 + $0x98] sm:$0xff] }
 0x6b9   :  { %3302 = vmatpush3.msra.mxu0 %v2050_v46 }
 0x6ba   :  { %3303 = vmatprep.subr.mxu0 %v2049_v48 }
 0x6bb   :  { %3304 = vmatpush3.msra.mxu0 %v2049_v48  ;;  %v2574_v48 = vld [vmem:[%s3893_s7] sm:$0xff]  ;;  %s3521_s7 = smov [#allocation13]  }
 0x6bc   :  { %3305 = vmatprep.subr.mxu0 %v2048_v50 }
 0x6bd   :  { %3306 = vmatpush3.msra.mxu0 %v2048_v50 }
 0x6be   :  { %3308 = vmatmul.mubr.msk.f32.vlgmr.msra.gmra.mxu0 %vm249_vm2, %v3276_v47 }
 0x76e   :  { %v3265_v53 = vpop.f32.mrf.mxu0 }
 0x76f   :  { %v1958_v4 = vadd.f32 %v3265_v53, %v1787_v2  ;;  %v2686_v2 = vld [vmem:[#allocation10 + $0xe0] sm:$0xff] }
 0x770   :  { %v1948_v54 = vpop.f32.mrf.mxu0 }
 0x771   :  { %v1957_v63 = vadd.f32 %v1948_v54, %v1782_v57  ;;  %v1964_v6 = vadd.f32 %v1962_v0, %v1958_v4  ;;  %v2689_v57 = vld [vmem:[#allocation10 + $0xf8] sm:$0xff] }
 0x772   :  { %v2685_v4 = vld [vmem:[#allocation10 + $0xd8] sm:$0xff] }
 0x773   :  { %v1963_v1 = vadd.f32 %v1962_v0, %v1957_v63  ;;  %v1966_v7 = vmax.f32 %v1964_v6, 0.0  ;;  %v2672_v63 = vld [vmem:[#allocation10 + $0x70] sm:$0xff]  ;;  %v2687_v0 = vld [vmem:[#allocation10 + $0xe8] sm:$0xff] }
 0x774   :  { %v2683_v6 = vld [vmem:[#allocation10 + $0xc8] sm:$0xff] }
 0x775   :  { %v1965_v5 = vmax.f32 %v1963_v1, 0.0  ;;  %v2671_v1 = vld [vmem:[#allocation10 + $0x68] sm:$0xff] }
 0x776   :  { %v3287_v55 = vpop.f32.mrf.mxu0 }
 0x778   :  { %v2118_v60 = vpop.f32.mrf.mxu0 }
 0x779   :  { %3296 = vmatprep.mubr.msk.f32.mxu1 %vm249_vm2, %v2118_v60  ;;  %v2688_v60 = vld [vmem:[#allocation10 + $0xf0] sm:$0xff] }
 0x77a   :  { %3297 = vmatmul.mubr.msk.f32.vlgmr.msra.gmra.mxu1 %vm249_vm2, %v3287_v55  ;;  %v2582_v55 = vld [vmem:[%s3894_s8] sm:$0x3]  ;;  %s2771_s8 = sshll.u32 %s3521_s7, 4  ;;  %s2772_s8 = int_to_ptr.vmem [resolvable:$true] %s2771_s8 }
 0x77b   :  { %3311 = vmatpush3.msra.mxu1 %v3749_v62  ;;  %3318 = vmatprep.mubr.msk.f32.mxu1 %vm249_vm2, %v3798_v35  ;;  %v1970_v62 = vld [vmem:[#allocation8 + $0x90] sm:$0xff]  ;;  %s3478_s6 = scalar_lea.vmem %s2772_s8, 32  ;;  %p3483_p3 = scmp.lt.s32.totalorder %s2772_s8, %s2772_s8 }
 0x77c   :  { %3312 = vmatprep.subr.mxu1 %v3747_v61  ;;  %p3479_p2 = scmp.ne.s32.totalorder %s2772_s8, %s3478_s6  ;;  %p3484_p4 = scmp.lt.s32.totalorder %s3478_s6, %s3478_s6 }
 0x77d   :  { %3313 = vmatpush3.msra.mxu1 %v3747_v61  ;;  %v1969_v61 = vld [vmem:[#allocation8 + $0x88] sm:$0xff] }
 0x77e   :  { %3314 = vmatprep.subr.mxu1 %v3741_v58  ;;  %v3309_v17 = vpop.f32.mrf.mxu0  ;;  %p3485_p5 = por %p3484_p4, %p3483_p3 }
 0x77f   :  { %3315 = vmatpush3.msra.mxu1 %v3741_v58  ;;  %v1968_v58 = vld [vmem:[#allocation8 + $0x80] sm:$0xff] }
 0x780   :  { %3316 = vmatprep.subr.mxu1 %v3739_v56  ;;  %v2285_v19 = vpop.f32.mrf.mxu0  ;;  %p3486_p6 = pnand %p3485_p5, %p3479_p2 }
 0x781   :  { %3317 = vmatpush3.msra.mxu1 %v3739_v56  ;;  %v2373_v56 = vld [vmem:[#allocation8 + $0xf8] sm:$0xff] }
 0x782   :  { %3319 = vmatmul.mubr.msk.f32.vlgmr.msra.gmra.mxu1 %vm249_vm2, %v3801_v36  ;;  %3332 = vmatprep.subr.mxu1 %v1971_v3 }
 0x783   :  { %3333 = vmatpush3.msra.mxu1 %v1971_v3  ;;  %3340 = vmatprep.mubr.msk.f32.mxu1 %vm249_vm2, %v1965_v5  ;;  %v2670_v3 = vld [vmem:[#allocation10 + $0x60] sm:$0xff]  ;;  %v2669_v5 = vld [vmem:[#allocation10 + $0x58] sm:$0xff] }
 0x784   :  { %3334 = vmatprep.subr.mxu1 %v1970_v62  ;;  %3321 = vmatprep.subr.mxu0 %v2373_v56 }
 0x785   :  { %3335 = vmatpush3.msra.mxu1 %v1970_v62  ;;  %3322 = vmatpush3.msra.mxu0 %v2373_v56  ;;  %v2684_v62 = vld [vmem:[#allocation10 + $0xd0] sm:$0xff]  ;;  %v2666_v56 = vld [vmem:[#allocation10 + $0x40] sm:$0xff] }
 0x786   :  { %3336 = vmatprep.subr.mxu1 %v1969_v61  ;;  %3323 = vmatprep.subr.mxu0 %v2372_v9 }
 0x787   :  { %3337 = vmatpush3.msra.mxu1 %v1969_v61  ;;  %3324 = vmatpush3.msra.mxu0 %v2372_v9  ;;  %v2668_v61 = vld [vmem:[#allocation10 + $0x50] sm:$0xff]  ;;  %v2681_v9 = vld [vmem:[#allocation10 + $0xb8] sm:$0xff] }
 0x788   :  { %3338 = vmatprep.subr.mxu1 %v1968_v58  ;;  %3325 = vmatprep.subr.mxu0 %v2371_v11 }
 0x789   :  { %3339 = vmatpush3.msra.mxu1 %v1968_v58  ;;  %3326 = vmatpush3.msra.mxu0 %v2371_v11  ;;  %v2667_v58 = vld [vmem:[#allocation10 + $0x48] sm:$0xff]  ;;  %v2665_v11 = vld [vmem:[#allocation10 + $0x38] sm:$0xff] }
 0x78a   :  { %3341 = vmatmul.mubr.msk.f32.vlgmr.msra.gmra.mxu1 %vm249_vm2, %v1966_v7  ;;  %3327 = vmatprep.subr.mxu0 %v2370_v12  ;;  %v2682_v7 = vld [vmem:[#allocation10 + $0xc0] sm:$0xff] }
 0x78b   :  { %3328 = vmatpush3.msra.mxu0 %v2370_v12  ;;  %v2680_v12 = vld [vmem:[#allocation10 + $0xb0] sm:$0xff] }
 0x83a   :  { %v3298_v13 = vpop.f32.mrf.mxu1 }
 0x83b   :  { %v2291_v20 = vadd.f32 %v3309_v17, %v3298_v13  ;;  %v2664_v13 = vld [vmem:[#allocation10 + $0x30] sm:$0xff]  ;;  %v2662_v17 = vld [vmem:[#allocation10 + $0x20] sm:$0xff] }
 0x83c   :  { %v2204_v14 = vpop.f32.mrf.mxu1 }
 0x83d   :  { %v2286_v23 = vadd.f32 %v2285_v19, %v2204_v14  ;;  %v2679_v14 = vld [vmem:[#allocation10 + $0xa8] sm:$0xff]  ;;  %v2661_v19 = vld [vmem:[#allocation10 + $0x18] sm:$0xff] }
 0x842   :  { %v3320_v15 = vpop.f32.mrf.mxu1 }
 0x844   :  { %v2360_v16 = vpop.f32.mrf.mxu1 }
 0x845   :  { %3329 = vmatprep.mubr.msk.f32.mxu0 %vm249_vm2, %v2360_v16  ;;  %v2678_v16 = vld [vmem:[#allocation10 + $0xa0] sm:$0xff] }
 0x846   :  { %3330 = vmatmul.mubr.msk.f32.vlgmr.msra.gmra.mxu0 %vm249_vm2, %v3320_v15  ;;  %v2663_v15 = vld [vmem:[#allocation10 + $0x28] sm:$0xff] }
 0x847   :  { %2651 = vmatprep.mubr.f32.mxu0 %v3520_v34 }
 0x84a   :  { %v3342_v21 = vpop.f32.mrf.mxu1 }
 0x84c   :  { %v2529_v29 = vpop.f32.mrf.mxu1 }
 0x906   :  { %v3331_v22 = vpop.f32.mrf.mxu0 }
 0x907   :  { %v2456_v24 = vadd.f32 %v3331_v22, %v2291_v20  ;;  %v2676_v20 = vld [vmem:[#allocation10 + $0x90] sm:$0xff]  ;;  %v2675_v22 = vld [vmem:[#allocation10 + $0x88] sm:$0xff] }
 0x908   :  { %v2446_v26 = vpop.f32.mrf.mxu0 }
 0x909   :  { %v2535_v27 = vadd.f32 %v3342_v21, %v2456_v24  ;;  %v2455_v28 = vadd.f32 %v2446_v26, %v2286_v23  ;;  %v2660_v21 = vld [vmem:[#allocation10 + $0x10] sm:$0xff]  ;;  %v2659_v23 = vld [vmem:[#allocation10 + $0x8] sm:$0xff]  ;;  %v2674_v24 = vld [vmem:[#allocation10 + $0x80] sm:$0xff] }
 0x90b   :  { %v2543_v30 = vadd.f32 %v2541_v25, %v2535_v27  ;;  %v2530_v31 = vadd.f32 %v2529_v29, %v2455_v28  ;;  %v2692_v28 = vsub.s32 6, %v3649_v8 }
 0x90d   :  { %v2545_v32 = vmax.f32 %v2543_v30, 0.0  ;;  %v2542_v33 = vadd.f32 %v2541_v25, %v2530_v31  ;;  %v2658_v25 = vld [vmem:[#allocation10] sm:$0xff] }
 0x90e   :  { %v3357_v30 = vld [vmem:[#allocation11] sm:$0xff] }
 0x90f   :  { %2562 = vrot.lane.b32.xlu1 %v2545_v32, %s3518_s3  ;;  %2550 = vrot.lane.b32.xlu0 %v2545_v32, %s3519_s15  ;;  %v2544_v35 = vmax.f32 %v2542_v33, 0.0  ;;  %v2693_v31 = vrot.slane %v3357_v30, %v2692_v28 }
 0x913   :  { %2556 = vrot.lane.b32.xlu0 %v2545_v32, %s3514_s11  ;;  %2548 = vrot.lane.b32.xlu1 %v2544_v35, %s3519_s15 }
 0x917   :  { %2554 = vrot.lane.b32.xlu0 %v2544_v35, %s3514_s11  ;;  %2560 = vrot.lane.b32.xlu1 %v2544_v35, %s3518_s3 }
 0x981   :  { %v2563_v10 = vpop.permute.xlu1 %2562  ;;  %v2551_v36 = vpop.permute.xlu0 %2550 }
 0x982   :  { %v2567_v37 = vsel %vm249_vm2, %v2545_v32, %v2551_v36 }
 0x985   :  { %v2557_v39 = vpop.permute.xlu0 %2556  ;;  %v2549_v40 = vpop.permute.xlu1 %2548 }
 0x986   :  { %v2570_v42 = vsel %vm2568_vm3, %v2567_v37, %v2557_v39  ;;  %v2566_v46 = vsel %vm249_vm2, %v2544_v35, %v2549_v40 }
 0x987   :  { %v2573_v43 = vsel %vm2571_vm4, %v2570_v42, %v2563_v10 }
 0x988   :  { %v2580_v44 = vmul.f32 %v2576_v38, %v2573_v43  ;;  %v2581_v45 = vmul.f32 %v2577_v41, %v2573_v43 }
 0x989   :  { %v2555_v47 = vpop.permute.xlu0 %2554  ;;  %v2561_v50 = vpop.permute.xlu1 %2560 }
 0x98a   :  { %v2569_v51 = vsel %vm2568_vm3, %v2566_v46, %v2555_v47  ;;  %2615 = vmatprep.subr.mxu0 %v2581_v45 }
 0x98b   :  { %v2572_v52 = vsel %vm2571_vm4, %v2569_v51, %v2561_v50  ;;  %2616 = vmatpush1.msra.mxu0 %v2580_v44 }
 0x98c   :  { %v2578_v53 = vmul.f32 %v2574_v48, %v2572_v52  ;;  %v2579_v54 = vmul.f32 %v2575_v49, %v2572_v52 }
 0x98e   :  { %2617 = vmatprep.subr.mxu0 %v2579_v54 }
 0x98f   :  { %2618 = vmatpush1.msra.mxu0 %v2578_v53 }
 0x990   :  { %2872 = vmatmul.mubr.msk.f32.vlgmr.msra.gmra.mxu0 %vm2583_vm5, %v2582_v55  ;;  %3031 = vmatprep.subr.mxu0 %v2689_v57 }
 0x991   :  { %3032 = vmatpush3.msra.mxu0 %v2673_v59 }
 0x992   :  { %3033 = vmatprep.subr.mxu0 %v2688_v60 }
 0x993   :  { %3034 = vmatpush3.msra.mxu0 %v2672_v63 }
 0x994   :  { %3035 = vmatprep.subr.mxu0 %v2687_v0 }
 0x995   :  { %3036 = vmatpush3.msra.mxu0 %v2671_v1 }
 0x996   :  { %3037 = vmatprep.subr.mxu0 %v2686_v2 }
 0x997   :  { %3038 = vmatpush3.msra.mxu0 %v2670_v3 }
 0x998   :  { %3039 = vmatprep.subr.mxu0 %v2685_v4 }
 0x999   :  { %3040 = vmatpush3.msra.mxu0 %v2669_v5 }
 0x99a   :  { %3041 = vmatprep.subr.mxu0 %v2684_v62 }
 0x99b   :  { %3042 = vmatpush3.msra.mxu0 %v2668_v61 }
 0x99c   :  { %3043 = vmatprep.subr.mxu0 %v2683_v6 }
 0x99d   :  { %3044 = vmatpush3.msra.mxu0 %v2667_v58 }
 0x99e   :  { %3045 = vmatprep.subr.mxu0 %v2682_v7 }
 0x99f   :  { %3046 = vmatpush3.msra.mxu0 %v2666_v56 }
 0x9a0   :  { %3047 = vmatprep.subr.mxu0 %v2681_v9 }
 0x9a1   :  { %3048 = vmatpush3.msra.mxu0 %v2665_v11 }
 0x9a2   :  { %3049 = vmatprep.subr.mxu0 %v2680_v12 }
 0x9a3   :  { %3050 = vmatpush3.msra.mxu0 %v2664_v13 }
 0x9a4   :  { %3051 = vmatprep.subr.mxu0 %v2679_v14 }
 0x9a5   :  { %3052 = vmatpush3.msra.mxu0 %v2663_v15 }
 0x9a6   :  { %3053 = vmatprep.subr.mxu0 %v2678_v16 }
 0x9a7   :  { %3054 = vmatpush3.msra.mxu0 %v2662_v17 }
 0x9a8   :  { %3055 = vmatprep.subr.mxu0 %v2677_v18 }
 0x9a9   :  { %3056 = vmatpush3.msra.mxu0 %v2661_v19 }
 0x9aa   :  { %3057 = vmatprep.subr.mxu0 %v2676_v20 }
 0x9ab   :  { %3058 = vmatpush3.msra.mxu0 %v2660_v21 }
 0x9ac   :  { %3059 = vmatprep.subr.mxu0 %v2675_v22 }
 0x9ad   :  { %3060 = vmatpush3.msra.mxu0 %v2659_v23 }
 0x9ae   :  { %3061 = vmatprep.subr.mxu0 %v2674_v24 }
 0x9af   :  { %3062 = vmatpush3.msra.mxu0 %v2658_v25 }
 0xa50   :  { %v2653_v26 = vpop.f32.mrf.mxu0 }
 0xa52   :  { %v2655_v27 = vpop.f32.mrf.mxu0 }
 0xa53   :  { %2758 = vmatprep.mubr.f32.mxu0 %v2655_v27 }
 0xa54   :  { %2759 = vmatmul.mubr.f32.vlgmr.msra.gmra.mxu0 %v2653_v26 }
 0xb14   :  { %v3063_v29 = vpop.f32.mrf.mxu0 }
 0xb16   :  { %v3064_v32 = vpop.f32.mrf.mxu0 }
 0xb17   :  { %v3065_v33 = vadd.f32 %v3064_v32, %v3063_v29 }
 0xb19   :  { %v2761_v34 = vadd.f32 %v3065_v33, %v2693_v31 }
 0xb1b   :  { %2764 = vst [vmem:[#allocation13] sm:$0x3] %v2761_v34 }
 0xb1c   :  { %3489 = shalt.err (!%p3486_p6)
}
 0xb1d   :  { %2774 = dma.vmem_to_hbm [thread:$0]  %s2772_s8, 32, %s3896_s10, [#allocation4]  }
 0xb1e   :  { %3506 = dma.done.wait [#allocation4], 32  }
 0xb1f   :  { %3507 = vsyncadd [#allocation4], 4294967264 }
 0xb20   :  { %2778 = vsyncpa [#allocation3], 1 }
 0xb21   :  { %2779 = vsyncpa [#allocation6], 1 }
 0xb22   :  { %2780 = vsyncpa [#allocation9], 1 }
 0xb23   :  { %2781 = vsyncpa [#allocation12], 1 }
 0xb24   :  { %2782 = vsyncpa [#allocation4], 1 }

</bundles_post_ra>
